<compile_context>
chip_gen: v7x
topology: tpu7x:2x2x1
jax: 0.10.0
libtpu: 0.0.40
codegen_flags: <defaults>
</compile_context>

<pallas_src>
import functools
import math

import jax
import jax.numpy as jnp
from jax.experimental import pallas as pl
from jax.experimental.pallas import tpu as pltpu

# Use full-f32 matmuls everywhere (reference and in-kernel) so the numeric check is tight.
jax.config.update("jax_default_matmul_precision", "highest")


# ---------------------------------------------------------------------------
# LayerNorm kernel
# ---------------------------------------------------------------------------
def _layernorm_kernel(x_ref, g_ref, b_ref, o_ref, *, eps):
    x = x_ref[...].astype(jnp.float32)
    mean = jnp.mean(x, axis=-1, keepdims=True)
    cen = x - mean
    var = jnp.mean(cen * cen, axis=-1, keepdims=True)   # unbiased=False
    y = cen * jax.lax.rsqrt(var + eps)
    o_ref[...] = (y * g_ref[...].astype(jnp.float32)
                  + b_ref[...].astype(jnp.float32)).astype(o_ref.dtype)


def layernorm(x, scale, shift, *, eps=1e-5, tm_cap=512):
    M, D = x.shape
    tm = M if M <= tm_cap else tm_cap          # tm_cap multiple of 8; ragged rows are safe
    return pl.pallas_call(
        functools.partial(_layernorm_kernel, eps=eps),
        out_shape=jax.ShapeDtypeStruct((M, D), x.dtype),
        grid_spec=pltpu.PrefetchScalarGridSpec(
            num_scalar_prefetch=0,
            grid=(pl.cdiv(M, tm),),
            in_specs=[pl.BlockSpec((tm, D), lambda i: (i, 0)),
                      pl.BlockSpec((1, D), lambda i: (0, 0)),
                      pl.BlockSpec((1, D), lambda i: (0, 0))],
            out_specs=pl.BlockSpec((tm, D), lambda i: (i, 0)),
        ),
        compiler_params=pltpu.CompilerParams(dimension_semantics=("parallel",)),
    )(x, scale.reshape(1, D), shift.reshape(1, D))


# ---------------------------------------------------------------------------
# Linear (matmul + bias [+ tanh-GELU] [+ residual]) kernel
# ---------------------------------------------------------------------------
def _linear_kernel(*refs, activation, has_residual):
    if has_residual:
        x_ref, w_ref, b_ref, r_ref, o_ref, acc_ref = refs
    else:
        x_ref, w_ref, b_ref, o_ref, acc_ref = refs
        r_ref = None

    @pl.when(pl.program_id(2) == 0)
    def _():
        acc_ref[...] = jnp.zeros_like(acc_ref)

    acc_ref[...] += jnp.dot(x_ref[...], w_ref[...],
                            preferred_element_type=jnp.float32)

    @pl.when(pl.program_id(2) == pl.num_programs(2) - 1)
    def _():
        out = acc_ref[...] + b_ref[...].astype(jnp.float32)
        if activation == "gelu":                      # tanh-approx GELU (matches module)
            c = math.sqrt(2.0 / math.pi)
            out = 0.5 * out * (1.0 + jnp.tanh(c * (out + 0.044715 * out * out * out)))
        if has_residual:
            out = out + r_ref[...].astype(jnp.float32)
        o_ref[...] = out.astype(o_ref.dtype)


def linear(x, w, b=None, *, activation=None, residual=None,
           tm_cap=256, tn_cap=512, tk_cap=512):
    M, K = x.shape
    K2, N = w.shape
    assert K == K2
    if b is None:                                     # qkv_bias=False case
        b = jnp.zeros((N,), dtype=x.dtype)
    b2 = b.reshape(1, N)

    # Byte-budgeted tile caps (caps are multiples of (8,128)); ragged M/N tiles are safe
    # because padded rows/cols are masked on store. K must tile exactly (it feeds the MXU
    # accumulation), so fall back to full K if it does not divide.
    tm = M if M <= tm_cap else tm_cap
    tn = N if N <= tn_cap else tn_cap
    if K <= tk_cap:
        tk = K
    else:
        tk = next((t for t in (512, 256, 128) if K % t == 0), K)

    in_specs = [
        pl.BlockSpec((tm, tk), lambda i, j, k: (i, k)),
        pl.BlockSpec((tk, tn), lambda i, j, k: (k, j)),
        pl.BlockSpec((1, tn), lambda i, j, k: (0, j)),
    ]
    args = [x, w, b2]
    if residual is not None:
        in_specs.append(pl.BlockSpec((tm, tn), lambda i, j, k: (i, j)))
        args.append(residual)

    kernel = functools.partial(_linear_kernel, activation=activation,
                               has_residual=residual is not None)
    return pl.pallas_call(
        kernel,
        out_shape=jax.ShapeDtypeStruct((M, N), x.dtype),
        grid_spec=pltpu.PrefetchScalarGridSpec(
            num_scalar_prefetch=0,
            grid=(pl.cdiv(M, tm), pl.cdiv(N, tn), pl.cdiv(K, tk)),
            in_specs=in_specs,
            out_specs=pl.BlockSpec((tm, tn), lambda i, j, k: (i, j)),
            scratch_shapes=[pltpu.VMEM((tm, tn), jnp.float32)],
        ),
        compiler_params=pltpu.CompilerParams(
            dimension_semantics=("parallel", "parallel", "arbitrary")),
    )(*args)


# ---------------------------------------------------------------------------
# Scaled-dot-product attention kernel (one (batch, head) per grid step)
# ---------------------------------------------------------------------------
def _attention_kernel(q_ref, k_ref, v_ref, o_ref, *, causal, scale):
    q = q_ref[...].astype(jnp.float32)                 # (Tq, Dh)
    k = k_ref[...].astype(jnp.float32)                 # (Tk, Dh)
    v = v_ref[...].astype(jnp.float32)                 # (Tk, Dh)
    s = jax.lax.dot_general(q, k, (((1,), (1,)), ((), ())),
                            preferred_element_type=jnp.float32) * scale
    if causal:
        tq, tk = s.shape
        row = jax.lax.broadcasted_iota(jnp.int32, (tq, tk), 0)
        col = jax.lax.broadcasted_iota(jnp.int32, (tq, tk), 1)
        s = jnp.where(col <= row, s, -1e30)
    m = jnp.max(s, axis=-1, keepdims=True)
    p = jnp.exp(s - m)
    l = jnp.sum(p, axis=-1, keepdims=True)
    o = jnp.dot(p, v, preferred_element_type=jnp.float32) / l
    o_ref[...] = o.astype(o_ref.dtype)


def mha_sdpa(q, k, v, *, causal):
    B, H, Tq, Dh = q.shape
    Tk = k.shape[2]
    spec_q = pl.BlockSpec((None, None, Tq, Dh), lambda b, h: (b, h, 0, 0))
    spec_kv = pl.BlockSpec((None, None, Tk, Dh), lambda b, h: (b, h, 0, 0))
    # TODO(synk): for long sequences this should be a flash-style kv-tiled kernel;
    # full-sequence blocks are fine at the context lengths exercised here.
    return pl.pallas_call(
        functools.partial(_attention_kernel, causal=causal, scale=1.0 / math.sqrt(Dh)),
        out_shape=jax.ShapeDtypeStruct((B, H, Tq, Dh), q.dtype),
        grid_spec=pltpu.PrefetchScalarGridSpec(
            num_scalar_prefetch=0,
            grid=(B, H),
            in_specs=[spec_q, spec_kv, spec_kv],
            out_specs=spec_q,
        ),
        compiler_params=pltpu.CompilerParams(
            dimension_semantics=("parallel", "parallel")),
    )(q, k, v)


# ---------------------------------------------------------------------------
# CrossAttentionTransformerBlock forward (Pallas)
# ---------------------------------------------------------------------------
def cross_attention_block_pallas(params, x_q, x_kv, *, n_heads):
    B, Tq, D = x_q.shape
    _, Tkv, _ = x_kv.shape
    H = n_heads
    Dh = D // H

    xq = x_q.reshape(B * Tq, D)
    xkv = x_kv.reshape(B * Tkv, D)

    # --- causal self-attention sub-block: x = x + att(norm1(x)) ---
    shortcut = xq
    h = layernorm(xq, params["norm1_scale"], params["norm1_shift"])
    qkv = linear(h, params["att_qkv_w"])                              # qkv_bias=False
    qkv = qkv.reshape(B, Tq, 3, H, Dh).transpose(2, 0, 3, 1, 4)
    ctx = mha_sdpa(qkv[0], qkv[1], qkv[2], causal=True)               # (B, H, Tq, Dh)
    ctx = ctx.transpose(0, 2, 1, 3).reshape(B * Tq, D)
    x = linear(ctx, params["att_proj_w"], params["att_proj_b"], residual=shortcut)

    # --- cross-attention sub-block: x = x + x_att(x, x_kv) (no pre-norm, per module) ---
    shortcut = x
    q = linear(x, params["xatt_q_w"]).reshape(B, Tq, H, Dh).transpose(0, 2, 1, 3)
    kv = linear(xkv, params["xatt_kv_w"]).reshape(B, Tkv, 2, H, Dh).transpose(2, 0, 3, 1, 4)
    ctx = mha_sdpa(q, kv[0], kv[1], causal=False)                     # (B, H, Tq, Dh)
    # Faithfully reproduces the module's `context_vec.transpose(1, -1).view(B, Tq, D)`.
    ctx = ctx.transpose(0, 3, 2, 1).reshape(B * Tq, D)
    # TODO(synk): drop_shortcut (nn.Dropout) and SDPA dropout omitted — identity in eval mode.
    x = linear(ctx, params["xatt_proj_w"], params["xatt_proj_b"], residual=shortcut)

    # --- feed-forward sub-block: x = x + ff(norm2(x)) ---
    shortcut = x
    h = layernorm(x, params["norm2_scale"], params["norm2_shift"])
    h = linear(h, params["ff_w1"], params["ff_b1"], activation="gelu")
    x = linear(h, params["ff_w2"], params["ff_b2"], residual=shortcut)

    return x.reshape(B, Tq, D)


# ---------------------------------------------------------------------------
# Pure-JAX reference (same math, no Pallas) for correctness checking
# ---------------------------------------------------------------------------
def cross_attention_block_reference(params, x_q, x_kv, *, n_heads):
    H = n_heads

    def ln(x, g, b):
        mean = jnp.mean(x, -1, keepdims=True)
        var = jnp.mean((x - mean) ** 2, -1, keepdims=True)
        return g * (x - mean) / jnp.sqrt(var + 1e-5) + b

    def gelu(x):
        return 0.5 * x * (1.0 + jnp.tanh(math.sqrt(2.0 / math.pi)
                                         * (x + 0.044715 * x ** 3)))

    def sdpa(q, k, v, causal):
        Dh = q.shape[-1]
        s = jnp.einsum("bhqd,bhkd->bhqk", q, k) / math.sqrt(Dh)
        if causal:
            tq, tk = s.shape[-2:]
            s = jnp.where(jnp.tril(jnp.ones((tq, tk), dtype=bool)), s, -jnp.inf)
        return jnp.einsum("bhqk,bhkd->bhqd", jax.nn.softmax(s, axis=-1), v)

    B, Tq, D = x_q.shape
    _, Tkv, _ = x_kv.shape
    Dh = D // H

    shortcut = x_q
    h = ln(x_q, params["norm1_scale"], params["norm1_shift"])
    qkv = (h @ params["att_qkv_w"]).reshape(B, Tq, 3, H, Dh).transpose(2, 0, 3, 1, 4)
    ctx = sdpa(qkv[0], qkv[1], qkv[2], causal=True)
    ctx = ctx.transpose(0, 2, 1, 3).reshape(B, Tq, D)
    x = ctx @ params["att_proj_w"] + params["att_proj_b"] + shortcut

    shortcut = x
    q = (x @ params["xatt_q_w"]).reshape(B, Tq, H, Dh).transpose(0, 2, 1, 3)
    kv = (x_kv @ params["xatt_kv_w"]).reshape(B, Tkv, 2, H, Dh).transpose(2, 0, 3, 1, 4)
    ctx = sdpa(q, kv[0], kv[1], causal=False)
    ctx = ctx.transpose(0, 3, 2, 1).reshape(B, Tq, D)
    x = ctx @ params["xatt_proj_w"] + params["xatt_proj_b"] + shortcut

    shortcut = x
    h = ln(x, params["norm2_scale"], params["norm2_shift"])
    h = gelu(h @ params["ff_w1"] + params["ff_b1"])
    x = h @ params["ff_w2"] + params["ff_b2"] + shortcut
    return x


def init_params(key, emb_dim, dtype=jnp.float32):
    ks = jax.random.split(key, 16)
    w = lambda k, shape: (0.05 * jax.random.normal(k, shape)).astype(dtype)
    return {
        "norm1_scale": jnp.ones((emb_dim,), dtype) + w(ks[0], (emb_dim,)),
        "norm1_shift": w(ks[1], (emb_dim,)),
        "norm2_scale": jnp.ones((emb_dim,), dtype) + w(ks[2], (emb_dim,)),
        "norm2_shift": w(ks[3], (emb_dim,)),
        "att_qkv_w": w(ks[4], (emb_dim, 3 * emb_dim)),        # qkv_bias=False
        "att_proj_w": w(ks[5], (emb_dim, emb_dim)),
        "att_proj_b": w(ks[6], (emb_dim,)),
        "xatt_q_w": w(ks[7], (emb_dim, emb_dim)),             # qkv_bias=False
        "xatt_kv_w": w(ks[8], (emb_dim, 2 * emb_dim)),        # qkv_bias=False
        "xatt_proj_w": w(ks[9], (emb_dim, emb_dim)),
        "xatt_proj_b": w(ks[10], (emb_dim,)),
        "ff_w1": w(ks[11], (emb_dim, 4 * emb_dim)),
        "ff_b1": w(ks[12], (4 * emb_dim,)),
        "ff_w2": w(ks[13], (4 * emb_dim, emb_dim)),
        "ff_b2": w(ks[14], (emb_dim,)),
    }


if __name__ == "__main__":
    key = jax.random.PRNGKey(0)
    emb_dim, n_heads = 32, 4                 # small-shape stand-in for GPT2 settings
    B, Tq, Tkv = 2, 8, 16

    kp, kq, kkv = jax.random.split(key, 3)
    params = init_params(kp, emb_dim)
    x_q = jax.random.normal(kq, (B, Tq, emb_dim), dtype=jnp.float32)
    x_kv = jax.random.normal(kkv, (B, Tkv, emb_dim), dtype=jnp.float32)

    fwd = jax.jit(functools.partial(cross_attention_block_pallas, n_heads=n_heads))
    y = fwd(params, x_q, x_kv)
    jax.block_until_ready(y)

    y_ref = cross_attention_block_reference(params, x_q, x_kv, n_heads=n_heads)
    assert y.shape == x_q.shape and y.dtype == x_q.dtype
    max_err = float(jnp.max(jnp.abs(y - y_ref)))
    assert jnp.allclose(y, y_ref, atol=2e-3, rtol=2e-3), f"max abs err {max_err}"

    print("KERNEL_OK")
</pallas_src>

<mosaic_0001>
module attributes {stable_mosaic.version = 11 : i64} {
  func.func @_layernorm_kernel(%arg0: i32, %arg1: memref<16x32xf32, #tpu.memory_space<vmem>>, %arg2: memref<1x32xf32, #tpu.memory_space<vmem>>, %arg3: memref<1x32xf32, #tpu.memory_space<vmem>>, %arg4: memref<16x32xf32, #tpu.memory_space<vmem>>) attributes {dimension_semantics = [#tpu.dimension_semantics<parallel>], iteration_bounds = array<i64: 1>, scalar_prefetch = 0 : i64, scratch_operands = 0 : i64, tpu.core_type = #tpu.core_type<tc>, window_params = [{transform_indices = @transform_0, window_bounds = array<i64: 16, 32>}, {pipeline_mode = #tpu.pipeline_mode<synchronous>, transform_indices = @transform_1, window_bounds = array<i64: 1, 32>}, {pipeline_mode = #tpu.pipeline_mode<synchronous>, transform_indices = @transform_2, window_bounds = array<i64: 1, 32>}, {transform_indices = @transform_3, window_bounds = array<i64: 16, 32>}]} {
    %c0 = arith.constant 0 : index
    %c0_0 = arith.constant 0 : index
    %0 = vector.load %arg1[%c0, %c0_0] : memref<16x32xf32, #tpu.memory_space<vmem>>, vector<16x32xf32>
    %cst = arith.constant dense<0.000000e+00> : vector<16xf32>
    %1 = vector.multi_reduction <add>, %0, %cst [1] : vector<16x32xf32> to vector<16xf32>
    %2 = vector.shape_cast %1 : vector<16xf32> to vector<16x1xf32>
    %cst_1 = arith.constant 3.200000e+01 : f32
    %3 = vector.broadcast %cst_1 : f32 to vector<16x1xf32>
    %4 = arith.divf %2, %3 : vector<16x1xf32>
    %5 = vector.broadcast %4 : vector<16x1xf32> to vector<16x32xf32>
    %6 = arith.subf %0, %5 : vector<16x32xf32>
    %7 = arith.mulf %6, %6 : vector<16x32xf32>
    %cst_2 = arith.constant dense<0.000000e+00> : vector<16xf32>
    %8 = vector.multi_reduction <add>, %7, %cst_2 [1] : vector<16x32xf32> to vector<16xf32>
    %9 = vector.shape_cast %8 : vector<16xf32> to vector<16x1xf32>
    %cst_3 = arith.constant 3.200000e+01 : f32
    %10 = vector.broadcast %cst_3 : f32 to vector<16x1xf32>
    %11 = arith.divf %9, %10 : vector<16x1xf32>
    %cst_4 = arith.constant 9.99999974E-6 : f32
    %12 = vector.broadcast %cst_4 : f32 to vector<16x1xf32>
    %13 = arith.addf %11, %12 : vector<16x1xf32>
    %14 = math.rsqrt %13 : vector<16x1xf32>
    %15 = vector.broadcast %14 : vector<16x1xf32> to vector<16x32xf32>
    %16 = arith.mulf %6, %15 : vector<16x32xf32>
    %c0_5 = arith.constant 0 : index
    %c0_6 = arith.constant 0 : index
    %17 = vector.load %arg2[%c0_5, %c0_6] : memref<1x32xf32, #tpu.memory_space<vmem>>, vector<1x32xf32>
    %18 = vector.broadcast %17 : vector<1x32xf32> to vector<16x32xf32>
    %19 = arith.mulf %16, %18 : vector<16x32xf32>
    %c0_7 = arith.constant 0 : index
    %c0_8 = arith.constant 0 : index
    %20 = vector.load %arg3[%c0_7, %c0_8] : memref<1x32xf32, #tpu.memory_space<vmem>>, vector<1x32xf32>
    %21 = vector.broadcast %20 : vector<1x32xf32> to vector<16x32xf32>
    %22 = arith.addf %19, %21 : vector<16x32xf32>
    %c0_9 = arith.constant 0 : index
    %c0_10 = arith.constant 0 : index
    %23 = vector.load %arg4[%c0_9, %c0_10] : memref<16x32xf32, #tpu.memory_space<vmem>>, vector<16x32xf32>
    tpu.vector_store %arg4[%c0_9, %c0_10], %22 {strides = array<i32>} : memref<16x32xf32, #tpu.memory_space<vmem>>, vector<16x32xf32>,
    return
  }
  func.func @transform_0(%arg0: i32) -> (i32, i32) {
    %c0_i32 = arith.constant 0 : i32
    %c0_i32_0 = arith.constant 0 : i32
    return %arg0, %c0_i32 : i32, i32
  }
  func.func @transform_1(%arg0: i32) -> (i32, i32) {
    %c0_i32 = arith.constant 0 : i32
    %c0_i32_0 = arith.constant 0 : i32
    %c0_i32_1 = arith.constant 0 : i32
    return %c0_i32, %c0_i32_0 : i32, i32
  }
  func.func @transform_2(%arg0: i32) -> (i32, i32) {
    %c0_i32 = arith.constant 0 : i32
    %c0_i32_0 = arith.constant 0 : i32
    %c0_i32_1 = arith.constant 0 : i32
    return %c0_i32, %c0_i32_0 : i32, i32
  }
  func.func @transform_3(%arg0: i32) -> (i32, i32) {
    %c0_i32 = arith.constant 0 : i32
    %c0_i32_0 = arith.constant 0 : i32
    return %arg0, %c0_i32 : i32, i32
  }
}

module attributes {stable_mosaic.version = 11 : i64} {
  func.func @_linear_kernel(%arg0: i32, %arg1: i32, %arg2: i32, %arg3: memref<16x32xf32, #tpu.memory_space<vmem>>, %arg4: memref<32x96xf32, #tpu.memory_space<vmem>>, %arg5: memref<1x96xf32, #tpu.memory_space<vmem>>, %arg6: memref<16x96xf32, #tpu.memory_space<vmem>>, %arg7: memref<16x96xf32, #tpu.memory_space<vmem>>) attributes {dimension_semantics = [#tpu.dimension_semantics<parallel>, #tpu.dimension_semantics<parallel>, #tpu.dimension_semantics<arbitrary>], iteration_bounds = array<i64: 1, 1, 1>, scalar_prefetch = 0 : i64, scratch_operands = 1 : i64, tpu.core_type = #tpu.core_type<tc>, window_params = [{transform_indices = @transform_0, window_bounds = array<i64: 16, 32>}, {transform_indices = @transform_1, window_bounds = array<i64: 32, 96>}, {transform_indices = @transform_2, window_bounds = array<i64: 1, 96>}, {transform_indices = @transform_3, window_bounds = array<i64: 16, 96>}]} {
    %c0_i32 = arith.constant 0 : i32
    %0 = arith.cmpi eq, %arg2, %c0_i32 : i32
    %1 = arith.extui %0 : i1 to i32
    %c0_i32_0 = arith.constant 0 : i32
    %2 = arith.cmpi ne, %1, %c0_i32_0 : i32
    scf.if %2 {
      %cst_10 = arith.constant 0.000000e+00 : f32
      %12 = vector.broadcast %cst_10 : f32 to vector<16x96xf32>
      %c0_11 = arith.constant 0 : index
      %c0_12 = arith.constant 0 : index
      %13 = vector.load %arg7[%c0_11, %c0_12] : memref<16x96xf32, #tpu.memory_space<vmem>>, vector<16x96xf32>
      tpu.vector_store %arg7[%c0_11, %c0_12], %12 {strides = array<i32>} : memref<16x96xf32, #tpu.memory_space<vmem>>, vector<16x96xf32>,
    } else {
    }
    %c0 = arith.constant 0 : index
    %c0_1 = arith.constant 0 : index
    %3 = vector.load %arg7[%c0, %c0_1] : memref<16x96xf32, #tpu.memory_space<vmem>>, vector<16x96xf32>
    %c0_2 = arith.constant 0 : index
    %c0_3 = arith.constant 0 : index
    %4 = vector.load %arg3[%c0_2, %c0_3] : memref<16x32xf32, #tpu.memory_space<vmem>>, vector<16x32xf32>
    %c0_4 = arith.constant 0 : index
    %c0_5 = arith.constant 0 : index
    %5 = vector.load %arg4[%c0_4, %c0_5] : memref<32x96xf32, #tpu.memory_space<vmem>>, vector<32x96xf32>
    %cst = arith.constant dense<0.000000e+00> : vector<16x96xf32>
    %6 = tpu.matmul %4, %5, %cst {dimension_numbers = #tpu.dot_dimension_numbers<[1], [0], [0], [1], [0, 0, 1, 1], [], []>, precision = #tpu.contract_precision<fp32>} : vector<16x32xf32>, vector<32x96xf32>, vector<16x96xf32> -> vector<16x96xf32>
    %7 = arith.addf %3, %6 : vector<16x96xf32>
    %c0_6 = arith.constant 0 : index
    %c0_7 = arith.constant 0 : index
    %8 = vector.load %arg7[%c0_6, %c0_7] : memref<16x96xf32, #tpu.memory_space<vmem>>, vector<16x96xf32>
    tpu.vector_store %arg7[%c0_6, %c0_7], %7 {strides = array<i32>} : memref<16x96xf32, #tpu.memory_space<vmem>>, vector<16x96xf32>,
    %c0_i32_8 = arith.constant 0 : i32
    %9 = arith.cmpi eq, %arg2, %c0_i32_8 : i32
    %10 = arith.extui %9 : i1 to i32
    %c0_i32_9 = arith.constant 0 : i32
    %11 = arith.cmpi ne, %10, %c0_i32_9 : i32
    scf.if %11 {
      %c0_10 = arith.constant 0 : index
      %c0_11 = arith.constant 0 : index
      %12 = vector.load %arg7[%c0_10, %c0_11] : memref<16x96xf32, #tpu.memory_space<vmem>>, vector<16x96xf32>
      %c0_12 = arith.constant 0 : index
      %c0_13 = arith.constant 0 : index
      %13 = vector.load %arg5[%c0_12, %c0_13] : memref<1x96xf32, #tpu.memory_space<vmem>>, vector<1x96xf32>
      %14 = vector.broadcast %13 : vector<1x96xf32> to vector<16x96xf32>
      %15 = arith.addf %12, %14 : vector<16x96xf32>
      %c0_14 = arith.constant 0 : index
      %c0_15 = arith.constant 0 : index
      %16 = vector.load %arg6[%c0_14, %c0_15] : memref<16x96xf32, #tpu.memory_space<vmem>>, vector<16x96xf32>
      tpu.vector_store %arg6[%c0_14, %c0_15], %15 {strides = array<i32>} : memref<16x96xf32, #tpu.memory_space<vmem>>, vector<16x96xf32>,
    } else {
    }
    return
  }
  func.func @transform_0(%arg0: i32, %arg1: i32, %arg2: i32) -> (i32, i32) {
    %c0_i32 = arith.constant 0 : i32
    return %arg0, %arg2 : i32, i32
  }
  func.func @transform_1(%arg0: i32, %arg1: i32, %arg2: i32) -> (i32, i32) {
    %c0_i32 = arith.constant 0 : i32
    return %arg2, %arg1 : i32, i32
  }
  func.func @transform_2(%arg0: i32, %arg1: i32, %arg2: i32) -> (i32, i32) {
    %c0_i32 = arith.constant 0 : i32
    %c0_i32_0 = arith.constant 0 : i32
    return %c0_i32, %arg1 : i32, i32
  }
  func.func @transform_3(%arg0: i32, %arg1: i32, %arg2: i32) -> (i32, i32) {
    %c0_i32 = arith.constant 0 : i32
    return %arg0, %arg1 : i32, i32
  }
}

module attributes {stable_mosaic.version = 11 : i64} {
  func.func @_attention_kernel(%arg0: i32, %arg1: i32, %arg2: memref<1x1x8x8xf32, #tpu.memory_space<vmem>>, %arg3: memref<1x1x8x8xf32, #tpu.memory_space<vmem>>, %arg4: memref<1x1x8x8xf32, #tpu.memory_space<vmem>>, %arg5: memref<1x1x8x8xf32, #tpu.memory_space<vmem>>) attributes {dimension_semantics = [#tpu.dimension_semantics<parallel>, #tpu.dimension_semantics<parallel>], iteration_bounds = array<i64: 2, 4>, scalar_prefetch = 0 : i64, scratch_operands = 0 : i64, tpu.core_type = #tpu.core_type<tc>, window_params = [{transform_indices = @transform_0, window_bounds = array<i64: 1, 1, 8, 8>}, {transform_indices = @transform_1, window_bounds = array<i64: 1, 1, 8, 8>}, {transform_indices = @transform_2, window_bounds = array<i64: 1, 1, 8, 8>}, {transform_indices = @transform_3, window_bounds = array<i64: 1, 1, 8, 8>}]} {
    %c0 = arith.constant 0 : index
    %c0_0 = arith.constant 0 : index
    %c0_1 = arith.constant 0 : index
    %c0_2 = arith.constant 0 : index
    %0 = vector.load %arg2[%c0, %c0_0, %c0_1, %c0_2] : memref<1x1x8x8xf32, #tpu.memory_space<vmem>>, vector<1x1x8x8xf32>
    %1 = vector.shape_cast %0 : vector<1x1x8x8xf32> to vector<8x8xf32>
    %c0_3 = arith.constant 0 : index
    %c0_4 = arith.constant 0 : index
    %c0_5 = arith.constant 0 : index
    %c0_6 = arith.constant 0 : index
    %2 = vector.load %arg3[%c0_3, %c0_4, %c0_5, %c0_6] : memref<1x1x8x8xf32, #tpu.memory_space<vmem>>, vector<1x1x8x8xf32>
    %3 = vector.shape_cast %2 : vector<1x1x8x8xf32> to vector<8x8xf32>
    %c0_7 = arith.constant 0 : index
    %c0_8 = arith.constant 0 : index
    %c0_9 = arith.constant 0 : index
    %c0_10 = arith.constant 0 : index
    %4 = vector.load %arg4[%c0_7, %c0_8, %c0_9, %c0_10] : memref<1x1x8x8xf32, #tpu.memory_space<vmem>>, vector<1x1x8x8xf32>
    %5 = vector.shape_cast %4 : vector<1x1x8x8xf32> to vector<8x8xf32>
    %cst = arith.constant dense<0.000000e+00> : vector<8x8xf32>
    %6 = tpu.matmul %1, %3, %cst {dimension_numbers = #tpu.dot_dimension_numbers<[1], [1], [0], [0], [0, 0, 1, 0], [], []>, precision = #tpu.contract_precision<fp32>} : vector<8x8xf32>, vector<8x8xf32>, vector<8x8xf32> -> vector<8x8xf32>
    %cst_11 = arith.constant 0.353553385 : f32
    %7 = vector.broadcast %cst_11 : f32 to vector<8x8xf32>
    %8 = arith.mulf %6, %7 : vector<8x8xf32>
    %9 = tpu.iota {dimensions = array<i32: 0>} : vector<8x8xi32>
    %10 = tpu.iota {dimensions = array<i32: 1>} : vector<8x8xi32>
    %11 = arith.cmpi sle, %10, %9 : vector<8x8xi32>
    %cst_12 = arith.constant -1.000000e+30 : f32
    %12 = vector.broadcast %cst_12 : f32 to vector<8x8xf32>
    %13 = arith.select %11, %8, %12 : vector<8x8xi1>, vector<8x8xf32>
    %cst_13 = arith.constant dense<0xFF800000> : vector<8xf32>
    %14 = vector.multi_reduction <maximumf>, %13, %cst_13 [1] : vector<8x8xf32> to vector<8xf32>
    %15 = vector.shape_cast %14 : vector<8xf32> to vector<8x1xf32>
    %16 = vector.broadcast %15 : vector<8x1xf32> to vector<8x8xf32>
    %17 = arith.subf %13, %16 : vector<8x8xf32>
    %18 = math.exp %17 : vector<8x8xf32>
    %cst_14 = arith.constant dense<0.000000e+00> : vector<8xf32>
    %19 = vector.multi_reduction <add>, %18, %cst_14 [1] : vector<8x8xf32> to vector<8xf32>
    %20 = vector.shape_cast %19 : vector<8xf32> to vector<8x1xf32>
    %cst_15 = arith.constant dense<0.000000e+00> : vector<8x8xf32>
    %21 = tpu.matmul %18, %5, %cst_15 {dimension_numbers = #tpu.dot_dimension_numbers<[1], [0], [0], [1], [0, 0, 1, 1], [], []>, precision = #tpu.contract_precision<fp32>} : vector<8x8xf32>, vector<8x8xf32>, vector<8x8xf32> -> vector<8x8xf32>
    %22 = vector.broadcast %20 : vector<8x1xf32> to vector<8x8xf32>
    %23 = arith.divf %21, %22 : vector<8x8xf32>
    %c0_16 = arith.constant 0 : index
    %c0_17 = arith.constant 0 : index
    %c0_18 = arith.constant 0 : index
    %c0_19 = arith.constant 0 : index
    %24 = vector.load %arg5[%c0_16, %c0_17, %c0_18, %c0_19] : memref<1x1x8x8xf32, #tpu.memory_space<vmem>>, vector<1x1x8x8xf32>
    %25 = vector.shape_cast %24 : vector<1x1x8x8xf32> to vector<8x8xf32>
    %26 = vector.shape_cast %23 : vector<8x8xf32> to vector<1x1x8x8xf32>
    tpu.vector_store %arg5[%c0_16, %c0_17, %c0_18, %c0_19], %26 {strides = array<i32>} : memref<1x1x8x8xf32, #tpu.memory_space<vmem>>, vector<1x1x8x8xf32>,
    return
  }
  func.func @transform_0(%arg0: i32, %arg1: i32) -> (i32, i32, i32, i32) {
    %c0_i32 = arith.constant 0 : i32
    %c0_i32_0 = arith.constant 0 : i32
    %c0_i32_1 = arith.constant 0 : i32
    return %arg0, %arg1, %c0_i32, %c0_i32_0 : i32, i32, i32, i32
  }
  func.func @transform_1(%arg0: i32, %arg1: i32) -> (i32, i32, i32, i32) {
    %c0_i32 = arith.constant 0 : i32
    %c0_i32_0 = arith.constant 0 : i32
    %c0_i32_1 = arith.constant 0 : i32
    return %arg0, %arg1, %c0_i32, %c0_i32_0 : i32, i32, i32, i32
  }
  func.func @transform_2(%arg0: i32, %arg1: i32) -> (i32, i32, i32, i32) {
    %c0_i32 = arith.constant 0 : i32
    %c0_i32_0 = arith.constant 0 : i32
    %c0_i32_1 = arith.constant 0 : i32
    return %arg0, %arg1, %c0_i32, %c0_i32_0 : i32, i32, i32, i32
  }
  func.func @transform_3(%arg0: i32, %arg1: i32) -> (i32, i32, i32, i32) {
    %c0_i32 = arith.constant 0 : i32
    %c0_i32_0 = arith.constant 0 : i32
    %c0_i32_1 = arith.constant 0 : i32
    return %arg0, %arg1, %c0_i32, %c0_i32_0 : i32, i32, i32, i32
  }
}

module attributes {stable_mosaic.version = 11 : i64} {
  func.func @_linear_kernel(%arg0: i32, %arg1: i32, %arg2: i32, %arg3: memref<16x32xf32, #tpu.memory_space<vmem>>, %arg4: memref<32x32xf32, #tpu.memory_space<vmem>>, %arg5: memref<1x32xf32, #tpu.memory_space<vmem>>, %arg6: memref<16x32xf32, #tpu.memory_space<vmem>>, %arg7: memref<16x32xf32, #tpu.memory_space<vmem>>, %arg8: memref<16x32xf32, #tpu.memory_space<vmem>>) attributes {dimension_semantics = [#tpu.dimension_semantics<parallel>, #tpu.dimension_semantics<parallel>, #tpu.dimension_semantics<arbitrary>], iteration_bounds = array<i64: 1, 1, 1>, scalar_prefetch = 0 : i64, scratch_operands = 1 : i64, tpu.core_type = #tpu.core_type<tc>, window_params = [{transform_indices = @transform_0, window_bounds = array<i64: 16, 32>}, {transform_indices = @transform_1, window_bounds = array<i64: 32, 32>}, {transform_indices = @transform_2, window_bounds = array<i64: 1, 32>}, {transform_indices = @transform_3, window_bounds = array<i64: 16, 32>}, {transform_indices = @transform_4, window_bounds = array<i64: 16, 32>}]} {
    %c0_i32 = arith.constant 0 : i32
    %0 = arith.cmpi eq, %arg2, %c0_i32 : i32
    %1 = arith.extui %0 : i1 to i32
    %c0_i32_0 = arith.constant 0 : i32
    %2 = arith.cmpi ne, %1, %c0_i32_0 : i32
    scf.if %2 {
      %cst_10 = arith.constant 0.000000e+00 : f32
      %12 = vector.broadcast %cst_10 : f32 to vector<16x32xf32>
      %c0_11 = arith.constant 0 : index
      %c0_12 = arith.constant 0 : index
      %13 = vector.load %arg8[%c0_11, %c0_12] : memref<16x32xf32, #tpu.memory_space<vmem>>, vector<16x32xf32>
      tpu.vector_store %arg8[%c0_11, %c0_12], %12 {strides = array<i32>} : memref<16x32xf32, #tpu.memory_space<vmem>>, vector<16x32xf32>,
    } else {
    }
    %c0 = arith.constant 0 : index
    %c0_1 = arith.constant 0 : index
    %3 = vector.load %arg8[%c0, %c0_1] : memref<16x32xf32, #tpu.memory_space<vmem>>, vector<16x32xf32>
    %c0_2 = arith.constant 0 : index
    %c0_3 = arith.constant 0 : index
    %4 = vector.load %arg3[%c0_2, %c0_3] : memref<16x32xf32, #tpu.memory_space<vmem>>, vector<16x32xf32>
    %c0_4 = arith.constant 0 : index
    %c0_5 = arith.constant 0 : index
    %5 = vector.load %arg4[%c0_4, %c0_5] : memref<32x32xf32, #tpu.memory_space<vmem>>, vector<32x32xf32>
    %cst = arith.constant dense<0.000000e+00> : vector<16x32xf32>
    %6 = tpu.matmul %4, %5, %cst {dimension_numbers = #tpu.dot_dimension_numbers<[1], [0], [0], [1], [0, 0, 1, 1], [], []>, precision = #tpu.contract_precision<fp32>} : vector<16x32xf32>, vector<32x32xf32>, vector<16x32xf32> -> vector<16x32xf32>
    %7 = arith.addf %3, %6 : vector<16x32xf32>
    %c0_6 = arith.constant 0 : index
    %c0_7 = arith.constant 0 : index
    %8 = vector.load %arg8[%c0_6, %c0_7] : memref<16x32xf32, #tpu.memory_space<vmem>>, vector<16x32xf32>
    tpu.vector_store %arg8[%c0_6, %c0_7], %7 {strides = array<i32>} : memref<16x32xf32, #tpu.memory_space<vmem>>, vector<16x32xf32>,
    %c0_i32_8 = arith.constant 0 : i32
    %9 = arith.cmpi eq, %arg2, %c0_i32_8 : i32
    %10 = arith.extui %9 : i1 to i32
    %c0_i32_9 = arith.constant 0 : i32
    %11 = arith.cmpi ne, %10, %c0_i32_9 : i32
    scf.if %11 {
      %c0_10 = arith.constant 0 : index
      %c0_11 = arith.constant 0 : index
      %12 = vector.load %arg8[%c0_10, %c0_11] : memref<16x32xf32, #tpu.memory_space<vmem>>, vector<16x32xf32>
      %c0_12 = arith.constant 0 : index
      %c0_13 = arith.constant 0 : index
      %13 = vector.load %arg5[%c0_12, %c0_13] : memref<1x32xf32, #tpu.memory_space<vmem>>, vector<1x32xf32>
      %14 = vector.broadcast %13 : vector<1x32xf32> to vector<16x32xf32>
      %15 = arith.addf %12, %14 : vector<16x32xf32>
      %c0_14 = arith.constant 0 : index
      %c0_15 = arith.constant 0 : index
      %16 = vector.load %arg6[%c0_14, %c0_15] : memref<16x32xf32, #tpu.memory_space<vmem>>, vector<16x32xf32>
      %17 = arith.addf %15, %16 : vector<16x32xf32>
      %c0_16 = arith.constant 0 : index
      %c0_17 = arith.constant 0 : index
      %18 = vector.load %arg7[%c0_16, %c0_17] : memref<16x32xf32, #tpu.memory_space<vmem>>, vector<16x32xf32>
      tpu.vector_store %arg7[%c0_16, %c0_17], %17 {strides = array<i32>} : memref<16x32xf32, #tpu.memory_space<vmem>>, vector<16x32xf32>,
    } else {
    }
    return
  }
  func.func @transform_0(%arg0: i32, %arg1: i32, %arg2: i32) -> (i32, i32) {
    %c0_i32 = arith.constant 0 : i32
    return %arg0, %arg2 : i32, i32
  }
  func.func @transform_1(%arg0: i32, %arg1: i32, %arg2: i32) -> (i32, i32) {
    %c0_i32 = arith.constant 0 : i32
    return %arg2, %arg1 : i32, i32
  }
  func.func @transform_2(%arg0: i32, %arg1: i32, %arg2: i32) -> (i32, i32) {
    %c0_i32 = arith.constant 0 : i32
    %c0_i32_0 = arith.constant 0 : i32
    return %c0_i32, %arg1 : i32, i32
  }
  func.func @transform_3(%arg0: i32, %arg1: i32, %arg2: i32) -> (i32, i32) {
    %c0_i32 = arith.constant 0 : i32
    return %arg0, %arg1 : i32, i32
  }
  func.func @transform_4(%arg0: i32, %arg1: i32, %arg2: i32) -> (i32, i32) {
    %c0_i32 = arith.constant 0 : i32
    return %arg0, %arg1 : i32, i32
  }
}

module attributes {stable_mosaic.version = 11 : i64} {
  func.func @_linear_kernel(%arg0: i32, %arg1: i32, %arg2: i32, %arg3: memref<16x32xf32, #tpu.memory_space<vmem>>, %arg4: memref<32x32xf32, #tpu.memory_space<vmem>>, %arg5: memref<1x32xf32, #tpu.memory_space<vmem>>, %arg6: memref<16x32xf32, #tpu.memory_space<vmem>>, %arg7: memref<16x32xf32, #tpu.memory_space<vmem>>) attributes {dimension_semantics = [#tpu.dimension_semantics<parallel>, #tpu.dimension_semantics<parallel>, #tpu.dimension_semantics<arbitrary>], iteration_bounds = array<i64: 1, 1, 1>, scalar_prefetch = 0 : i64, scratch_operands = 1 : i64, tpu.core_type = #tpu.core_type<tc>, window_params = [{transform_indices = @transform_0, window_bounds = array<i64: 16, 32>}, {transform_indices = @transform_1, window_bounds = array<i64: 32, 32>}, {transform_indices = @transform_2, window_bounds = array<i64: 1, 32>}, {transform_indices = @transform_3, window_bounds = array<i64: 16, 32>}]} {
    %c0_i32 = arith.constant 0 : i32
    %0 = arith.cmpi eq, %arg2, %c0_i32 : i32
    %1 = arith.extui %0 : i1 to i32
    %c0_i32_0 = arith.constant 0 : i32
    %2 = arith.cmpi ne, %1, %c0_i32_0 : i32
    scf.if %2 {
      %cst_10 = arith.constant 0.000000e+00 : f32
      %12 = vector.broadcast %cst_10 : f32 to vector<16x32xf32>
      %c0_11 = arith.constant 0 : index
      %c0_12 = arith.constant 0 : index
      %13 = vector.load %arg7[%c0_11, %c0_12] : memref<16x32xf32, #tpu.memory_space<vmem>>, vector<16x32xf32>
      tpu.vector_store %arg7[%c0_11, %c0_12], %12 {strides = array<i32>} : memref<16x32xf32, #tpu.memory_space<vmem>>, vector<16x32xf32>,
    } else {
    }
    %c0 = arith.constant 0 : index
    %c0_1 = arith.constant 0 : index
    %3 = vector.load %arg7[%c0, %c0_1] : memref<16x32xf32, #tpu.memory_space<vmem>>, vector<16x32xf32>
    %c0_2 = arith.constant 0 : index
    %c0_3 = arith.constant 0 : index
    %4 = vector.load %arg3[%c0_2, %c0_3] : memref<16x32xf32, #tpu.memory_space<vmem>>, vector<16x32xf32>
    %c0_4 = arith.constant 0 : index
    %c0_5 = arith.constant 0 : index
    %5 = vector.load %arg4[%c0_4, %c0_5] : memref<32x32xf32, #tpu.memory_space<vmem>>, vector<32x32xf32>
    %cst = arith.constant dense<0.000000e+00> : vector<16x32xf32>
    %6 = tpu.matmul %4, %5, %cst {dimension_numbers = #tpu.dot_dimension_numbers<[1], [0], [0], [1], [0, 0, 1, 1], [], []>, precision = #tpu.contract_precision<fp32>} : vector<16x32xf32>, vector<32x32xf32>, vector<16x32xf32> -> vector<16x32xf32>
    %7 = arith.addf %3, %6 : vector<16x32xf32>
    %c0_6 = arith.constant 0 : index
    %c0_7 = arith.constant 0 : index
    %8 = vector.load %arg7[%c0_6, %c0_7] : memref<16x32xf32, #tpu.memory_space<vmem>>, vector<16x32xf32>
    tpu.vector_store %arg7[%c0_6, %c0_7], %7 {strides = array<i32>} : memref<16x32xf32, #tpu.memory_space<vmem>>, vector<16x32xf32>,
    %c0_i32_8 = arith.constant 0 : i32
    %9 = arith.cmpi eq, %arg2, %c0_i32_8 : i32
    %10 = arith.extui %9 : i1 to i32
    %c0_i32_9 = arith.constant 0 : i32
    %11 = arith.cmpi ne, %10, %c0_i32_9 : i32
    scf.if %11 {
      %c0_10 = arith.constant 0 : index
      %c0_11 = arith.constant 0 : index
      %12 = vector.load %arg7[%c0_10, %c0_11] : memref<16x32xf32, #tpu.memory_space<vmem>>, vector<16x32xf32>
      %c0_12 = arith.constant 0 : index
      %c0_13 = arith.constant 0 : index
      %13 = vector.load %arg5[%c0_12, %c0_13] : memref<1x32xf32, #tpu.memory_space<vmem>>, vector<1x32xf32>
      %14 = vector.broadcast %13 : vector<1x32xf32> to vector<16x32xf32>
      %15 = arith.addf %12, %14 : vector<16x32xf32>
      %c0_14 = arith.constant 0 : index
      %c0_15 = arith.constant 0 : index
      %16 = vector.load %arg6[%c0_14, %c0_15] : memref<16x32xf32, #tpu.memory_space<vmem>>, vector<16x32xf32>
      tpu.vector_store %arg6[%c0_14, %c0_15], %15 {strides = array<i32>} : memref<16x32xf32, #tpu.memory_space<vmem>>, vector<16x32xf32>,
    } else {
    }
    return
  }
  func.func @transform_0(%arg0: i32, %arg1: i32, %arg2: i32) -> (i32, i32) {
    %c0_i32 = arith.constant 0 : i32
    return %arg0, %arg2 : i32, i32
  }
  func.func @transform_1(%arg0: i32, %arg1: i32, %arg2: i32) -> (i32, i32) {
    %c0_i32 = arith.constant 0 : i32
    return %arg2, %arg1 : i32, i32
  }
  func.func @transform_2(%arg0: i32, %arg1: i32, %arg2: i32) -> (i32, i32) {
    %c0_i32 = arith.constant 0 : i32
    %c0_i32_0 = arith.constant 0 : i32
    return %c0_i32, %arg1 : i32, i32
  }
  func.func @transform_3(%arg0: i32, %arg1: i32, %arg2: i32) -> (i32, i32) {
    %c0_i32 = arith.constant 0 : i32
    return %arg0, %arg1 : i32, i32
  }
}

module attributes {stable_mosaic.version = 11 : i64} {
  func.func @_linear_kernel(%arg0: i32, %arg1: i32, %arg2: i32, %arg3: memref<32x32xf32, #tpu.memory_space<vmem>>, %arg4: memref<32x64xf32, #tpu.memory_space<vmem>>, %arg5: memref<1x64xf32, #tpu.memory_space<vmem>>, %arg6: memref<32x64xf32, #tpu.memory_space<vmem>>, %arg7: memref<32x64xf32, #tpu.memory_space<vmem>>) attributes {dimension_semantics = [#tpu.dimension_semantics<parallel>, #tpu.dimension_semantics<parallel>, #tpu.dimension_semantics<arbitrary>], iteration_bounds = array<i64: 1, 1, 1>, scalar_prefetch = 0 : i64, scratch_operands = 1 : i64, tpu.core_type = #tpu.core_type<tc>, window_params = [{transform_indices = @transform_0, window_bounds = array<i64: 32, 32>}, {transform_indices = @transform_1, window_bounds = array<i64: 32, 64>}, {transform_indices = @transform_2, window_bounds = array<i64: 1, 64>}, {transform_indices = @transform_3, window_bounds = array<i64: 32, 64>}]} {
    %c0_i32 = arith.constant 0 : i32
    %0 = arith.cmpi eq, %arg2, %c0_i32 : i32
    %1 = arith.extui %0 : i1 to i32
    %c0_i32_0 = arith.constant 0 : i32
    %2 = arith.cmpi ne, %1, %c0_i32_0 : i32
    scf.if %2 {
      %cst_10 = arith.constant 0.000000e+00 : f32
      %12 = vector.broadcast %cst_10 : f32 to vector<32x64xf32>
      %c0_11 = arith.constant 0 : index
      %c0_12 = arith.constant 0 : index
      %13 = vector.load %arg7[%c0_11, %c0_12] : memref<32x64xf32, #tpu.memory_space<vmem>>, vector<32x64xf32>
      tpu.vector_store %arg7[%c0_11, %c0_12], %12 {strides = array<i32>} : memref<32x64xf32, #tpu.memory_space<vmem>>, vector<32x64xf32>,
    } else {
    }
    %c0 = arith.constant 0 : index
    %c0_1 = arith.constant 0 : index
    %3 = vector.load %arg7[%c0, %c0_1] : memref<32x64xf32, #tpu.memory_space<vmem>>, vector<32x64xf32>
    %c0_2 = arith.constant 0 : index
    %c0_3 = arith.constant 0 : index
    %4 = vector.load %arg3[%c0_2, %c0_3] : memref<32x32xf32, #tpu.memory_space<vmem>>, vector<32x32xf32>
    %c0_4 = arith.constant 0 : index
    %c0_5 = arith.constant 0 : index
    %5 = vector.load %arg4[%c0_4, %c0_5] : memref<32x64xf32, #tpu.memory_space<vmem>>, vector<32x64xf32>
    %cst = arith.constant dense<0.000000e+00> : vector<32x64xf32>
    %6 = tpu.matmul %4, %5, %cst {dimension_numbers = #tpu.dot_dimension_numbers<[1], [0], [0], [1], [0, 0, 1, 1], [], []>, precision = #tpu.contract_precision<fp32>} : vector<32x32xf32>, vector<32x64xf32>, vector<32x64xf32> -> vector<32x64xf32>
    %7 = arith.addf %3, %6 : vector<32x64xf32>
    %c0_6 = arith.constant 0 : index
    %c0_7 = arith.constant 0 : index
    %8 = vector.load %arg7[%c0_6, %c0_7] : memref<32x64xf32, #tpu.memory_space<vmem>>, vector<32x64xf32>
    tpu.vector_store %arg7[%c0_6, %c0_7], %7 {strides = array<i32>} : memref<32x64xf32, #tpu.memory_space<vmem>>, vector<32x64xf32>,
    %c0_i32_8 = arith.constant 0 : i32
    %9 = arith.cmpi eq, %arg2, %c0_i32_8 : i32
    %10 = arith.extui %9 : i1 to i32
    %c0_i32_9 = arith.constant 0 : i32
    %11 = arith.cmpi ne, %10, %c0_i32_9 : i32
    scf.if %11 {
      %c0_10 = arith.constant 0 : index
      %c0_11 = arith.constant 0 : index
      %12 = vector.load %arg7[%c0_10, %c0_11] : memref<32x64xf32, #tpu.memory_space<vmem>>, vector<32x64xf32>
      %c0_12 = arith.constant 0 : index
      %c0_13 = arith.constant 0 : index
      %13 = vector.load %arg5[%c0_12, %c0_13] : memref<1x64xf32, #tpu.memory_space<vmem>>, vector<1x64xf32>
      %14 = vector.broadcast %13 : vector<1x64xf32> to vector<32x64xf32>
      %15 = arith.addf %12, %14 : vector<32x64xf32>
      %c0_14 = arith.constant 0 : index
      %c0_15 = arith.constant 0 : index
      %16 = vector.load %arg6[%c0_14, %c0_15] : memref<32x64xf32, #tpu.memory_space<vmem>>, vector<32x64xf32>
      tpu.vector_store %arg6[%c0_14, %c0_15], %15 {strides = array<i32>} : memref<32x64xf32, #tpu.memory_space<vmem>>, vector<32x64xf32>,
    } else {
    }
    return
  }
  func.func @transform_0(%arg0: i32, %arg1: i32, %arg2: i32) -> (i32, i32) {
    %c0_i32 = arith.constant 0 : i32
    return %arg0, %arg2 : i32, i32
  }
  func.func @transform_1(%arg0: i32, %arg1: i32, %arg2: i32) -> (i32, i32) {
    %c0_i32 = arith.constant 0 : i32
    return %arg2, %arg1 : i32, i32
  }
  func.func @transform_2(%arg0: i32, %arg1: i32, %arg2: i32) -> (i32, i32) {
    %c0_i32 = arith.constant 0 : i32
    %c0_i32_0 = arith.constant 0 : i32
    return %c0_i32, %arg1 : i32, i32
  }
  func.func @transform_3(%arg0: i32, %arg1: i32, %arg2: i32) -> (i32, i32) {
    %c0_i32 = arith.constant 0 : i32
    return %arg0, %arg1 : i32, i32
  }
}

module attributes {stable_mosaic.version = 11 : i64} {
  func.func @_attention_kernel(%arg0: i32, %arg1: i32, %arg2: memref<1x1x8x8xf32, #tpu.memory_space<vmem>>, %arg3: memref<1x1x16x8xf32, #tpu.memory_space<vmem>>, %arg4: memref<1x1x16x8xf32, #tpu.memory_space<vmem>>, %arg5: memref<1x1x8x8xf32, #tpu.memory_space<vmem>>) attributes {dimension_semantics = [#tpu.dimension_semantics<parallel>, #tpu.dimension_semantics<parallel>], iteration_bounds = array<i64: 2, 4>, scalar_prefetch = 0 : i64, scratch_operands = 0 : i64, tpu.core_type = #tpu.core_type<tc>, window_params = [{transform_indices = @transform_0, window_bounds = array<i64: 1, 1, 8, 8>}, {transform_indices = @transform_1, window_bounds = array<i64: 1, 1, 16, 8>}, {transform_indices = @transform_2, window_bounds = array<i64: 1, 1, 16, 8>}, {transform_indices = @transform_3, window_bounds = array<i64: 1, 1, 8, 8>}]} {
    %c0 = arith.constant 0 : index
    %c0_0 = arith.constant 0 : index
    %c0_1 = arith.constant 0 : index
    %c0_2 = arith.constant 0 : index
    %0 = vector.load %arg2[%c0, %c0_0, %c0_1, %c0_2] : memref<1x1x8x8xf32, #tpu.memory_space<vmem>>, vector<1x1x8x8xf32>
    %1 = vector.shape_cast %0 : vector<1x1x8x8xf32> to vector<8x8xf32>
    %c0_3 = arith.constant 0 : index
    %c0_4 = arith.constant 0 : index
    %c0_5 = arith.constant 0 : index
    %c0_6 = arith.constant 0 : index
    %2 = vector.load %arg3[%c0_3, %c0_4, %c0_5, %c0_6] : memref<1x1x16x8xf32, #tpu.memory_space<vmem>>, vector<1x1x16x8xf32>
    %3 = vector.shape_cast %2 : vector<1x1x16x8xf32> to vector<16x8xf32>
    %c0_7 = arith.constant 0 : index
    %c0_8 = arith.constant 0 : index
    %c0_9 = arith.constant 0 : index
    %c0_10 = arith.constant 0 : index
    %4 = vector.load %arg4[%c0_7, %c0_8, %c0_9, %c0_10] : memref<1x1x16x8xf32, #tpu.memory_space<vmem>>, vector<1x1x16x8xf32>
    %5 = vector.shape_cast %4 : vector<1x1x16x8xf32> to vector<16x8xf32>
    %cst = arith.constant dense<0.000000e+00> : vector<8x16xf32>
    %6 = tpu.matmul %1, %3, %cst {dimension_numbers = #tpu.dot_dimension_numbers<[1], [1], [0], [0], [0, 0, 1, 0], [], []>, precision = #tpu.contract_precision<fp32>} : vector<8x8xf32>, vector<16x8xf32>, vector<8x16xf32> -> vector<8x16xf32>
    %cst_11 = arith.constant 0.353553385 : f32
    %7 = vector.broadcast %cst_11 : f32 to vector<8x16xf32>
    %8 = arith.mulf %6, %7 : vector<8x16xf32>
    %cst_12 = arith.constant dense<0xFF800000> : vector<8xf32>
    %9 = vector.multi_reduction <maximumf>, %8, %cst_12 [1] : vector<8x16xf32> to vector<8xf32>
    %10 = vector.shape_cast %9 : vector<8xf32> to vector<8x1xf32>
    %11 = vector.broadcast %10 : vector<8x1xf32> to vector<8x16xf32>
    %12 = arith.subf %8, %11 : vector<8x16xf32>
    %13 = math.exp %12 : vector<8x16xf32>
    %cst_13 = arith.constant dense<0.000000e+00> : vector<8xf32>
    %14 = vector.multi_reduction <add>, %13, %cst_13 [1] : vector<8x16xf32> to vector<8xf32>
    %15 = vector.shape_cast %14 : vector<8xf32> to vector<8x1xf32>
    %cst_14 = arith.constant dense<0.000000e+00> : vector<8x8xf32>
    %16 = tpu.matmul %13, %5, %cst_14 {dimension_numbers = #tpu.dot_dimension_numbers<[1], [0], [0], [1], [0, 0, 1, 1], [], []>, precision = #tpu.contract_precision<fp32>} : vector<8x16xf32>, vector<16x8xf32>, vector<8x8xf32> -> vector<8x8xf32>
    %17 = vector.broadcast %15 : vector<8x1xf32> to vector<8x8xf32>
    %18 = arith.divf %16, %17 : vector<8x8xf32>
    %c0_15 = arith.constant 0 : index
    %c0_16 = arith.constant 0 : index
    %c0_17 = arith.constant 0 : index
    %c0_18 = arith.constant 0 : index
    %19 = vector.load %arg5[%c0_15, %c0_16, %c0_17, %c0_18] : memref<1x1x8x8xf32, #tpu.memory_space<vmem>>, vector<1x1x8x8xf32>
    %20 = vector.shape_cast %19 : vector<1x1x8x8xf32> to vector<8x8xf32>
    %21 = vector.shape_cast %18 : vector<8x8xf32> to vector<1x1x8x8xf32>
    tpu.vector_store %arg5[%c0_15, %c0_16, %c0_17, %c0_18], %21 {strides = array<i32>} : memref<1x1x8x8xf32, #tpu.memory_space<vmem>>, vector<1x1x8x8xf32>,
    return
  }
  func.func @transform_0(%arg0: i32, %arg1: i32) -> (i32, i32, i32, i32) {
    %c0_i32 = arith.constant 0 : i32
    %c0_i32_0 = arith.constant 0 : i32
    %c0_i32_1 = arith.constant 0 : i32
    return %arg0, %arg1, %c0_i32, %c0_i32_0 : i32, i32, i32, i32
  }
  func.func @transform_1(%arg0: i32, %arg1: i32) -> (i32, i32, i32, i32) {
    %c0_i32 = arith.constant 0 : i32
    %c0_i32_0 = arith.constant 0 : i32
    %c0_i32_1 = arith.constant 0 : i32
    return %arg0, %arg1, %c0_i32, %c0_i32_0 : i32, i32, i32, i32
  }
  func.func @transform_2(%arg0: i32, %arg1: i32) -> (i32, i32, i32, i32) {
    %c0_i32 = arith.constant 0 : i32
    %c0_i32_0 = arith.constant 0 : i32
    %c0_i32_1 = arith.constant 0 : i32
    return %arg0, %arg1, %c0_i32, %c0_i32_0 : i32, i32, i32, i32
  }
  func.func @transform_3(%arg0: i32, %arg1: i32) -> (i32, i32, i32, i32) {
    %c0_i32 = arith.constant 0 : i32
    %c0_i32_0 = arith.constant 0 : i32
    %c0_i32_1 = arith.constant 0 : i32
    return %arg0, %arg1, %c0_i32, %c0_i32_0 : i32, i32, i32, i32
  }
}

module attributes {stable_mosaic.version = 11 : i64} {
  func.func @_linear_kernel(%arg0: i32, %arg1: i32, %arg2: i32, %arg3: memref<16x32xf32, #tpu.memory_space<vmem>>, %arg4: memref<32x128xf32, #tpu.memory_space<vmem>>, %arg5: memref<1x128xf32, #tpu.memory_space<vmem>>, %arg6: memref<16x128xf32, #tpu.memory_space<vmem>>, %arg7: memref<16x128xf32, #tpu.memory_space<vmem>>) attributes {dimension_semantics = [#tpu.dimension_semantics<parallel>, #tpu.dimension_semantics<parallel>, #tpu.dimension_semantics<arbitrary>], iteration_bounds = array<i64: 1, 1, 1>, scalar_prefetch = 0 : i64, scratch_operands = 1 : i64, tpu.core_type = #tpu.core_type<tc>, window_params = [{transform_indices = @transform_0, window_bounds = array<i64: 16, 32>}, {transform_indices = @transform_1, window_bounds = array<i64: 32, 128>}, {transform_indices = @transform_2, window_bounds = array<i64: 1, 128>}, {transform_indices = @transform_3, window_bounds = array<i64: 16, 128>}]} {
    %c0_i32 = arith.constant 0 : i32
    %0 = arith.cmpi eq, %arg2, %c0_i32 : i32
    %1 = arith.extui %0 : i1 to i32
    %c0_i32_0 = arith.constant 0 : i32
    %2 = arith.cmpi ne, %1, %c0_i32_0 : i32
    scf.if %2 {
      %cst_10 = arith.constant 0.000000e+00 : f32
      %12 = vector.broadcast %cst_10 : f32 to vector<16x128xf32>
      %c0_11 = arith.constant 0 : index
      %c0_12 = arith.constant 0 : index
      %13 = vector.load %arg7[%c0_11, %c0_12] : memref<16x128xf32, #tpu.memory_space<vmem>>, vector<16x128xf32>
      tpu.vector_store %arg7[%c0_11, %c0_12], %12 {strides = array<i32>} : memref<16x128xf32, #tpu.memory_space<vmem>>, vector<16x128xf32>,
    } else {
    }
    %c0 = arith.constant 0 : index
    %c0_1 = arith.constant 0 : index
    %3 = vector.load %arg7[%c0, %c0_1] : memref<16x128xf32, #tpu.memory_space<vmem>>, vector<16x128xf32>
    %c0_2 = arith.constant 0 : index
    %c0_3 = arith.constant 0 : index
    %4 = vector.load %arg3[%c0_2, %c0_3] : memref<16x32xf32, #tpu.memory_space<vmem>>, vector<16x32xf32>
    %c0_4 = arith.constant 0 : index
    %c0_5 = arith.constant 0 : index
    %5 = vector.load %arg4[%c0_4, %c0_5] : memref<32x128xf32, #tpu.memory_space<vmem>>, vector<32x128xf32>
    %cst = arith.constant dense<0.000000e+00> : vector<16x128xf32>
    %6 = tpu.matmul %4, %5, %cst {dimension_numbers = #tpu.dot_dimension_numbers<[1], [0], [0], [1], [0, 0, 1, 1], [], []>, precision = #tpu.contract_precision<fp32>} : vector<16x32xf32>, vector<32x128xf32>, vector<16x128xf32> -> vector<16x128xf32>
    %7 = arith.addf %3, %6 : vector<16x128xf32>
    %c0_6 = arith.constant 0 : index
    %c0_7 = arith.constant 0 : index
    %8 = vector.load %arg7[%c0_6, %c0_7] : memref<16x128xf32, #tpu.memory_space<vmem>>, vector<16x128xf32>
    tpu.vector_store %arg7[%c0_6, %c0_7], %7 {strides = array<i32>} : memref<16x128xf32, #tpu.memory_space<vmem>>, vector<16x128xf32>,
    %c0_i32_8 = arith.constant 0 : i32
    %9 = arith.cmpi eq, %arg2, %c0_i32_8 : i32
    %10 = arith.extui %9 : i1 to i32
    %c0_i32_9 = arith.constant 0 : i32
    %11 = arith.cmpi ne, %10, %c0_i32_9 : i32
    scf.if %11 {
      %c0_10 = arith.constant 0 : index
      %c0_11 = arith.constant 0 : index
      %12 = vector.load %arg7[%c0_10, %c0_11] : memref<16x128xf32, #tpu.memory_space<vmem>>, vector<16x128xf32>
      %c0_12 = arith.constant 0 : index
      %c0_13 = arith.constant 0 : index
      %13 = vector.load %arg5[%c0_12, %c0_13] : memref<1x128xf32, #tpu.memory_space<vmem>>, vector<1x128xf32>
      %14 = vector.broadcast %13 : vector<1x128xf32> to vector<16x128xf32>
      %15 = arith.addf %12, %14 : vector<16x128xf32>
      %cst_14 = arith.constant 5.000000e-01 : f32
      %16 = vector.broadcast %cst_14 : f32 to vector<16x128xf32>
      %17 = arith.mulf %16, %15 : vector<16x128xf32>
      %cst_15 = arith.constant 4.471500e-02 : f32
      %18 = vector.broadcast %cst_15 : f32 to vector<16x128xf32>
      %19 = arith.mulf %18, %15 : vector<16x128xf32>
      %20 = arith.mulf %19, %15 : vector<16x128xf32>
      %21 = arith.mulf %20, %15 : vector<16x128xf32>
      %22 = arith.addf %15, %21 : vector<16x128xf32>
      %cst_16 = arith.constant 0.797884583 : f32
      %23 = vector.broadcast %cst_16 : f32 to vector<16x128xf32>
      %24 = arith.mulf %23, %22 : vector<16x128xf32>
      %25 = math.tanh %24 : vector<16x128xf32>
      %cst_17 = arith.constant 1.000000e+00 : f32
      %26 = vector.broadcast %cst_17 : f32 to vector<16x128xf32>
      %27 = arith.addf %26, %25 : vector<16x128xf32>
      %28 = arith.mulf %17, %27 : vector<16x128xf32>
      %c0_18 = arith.constant 0 : index
      %c0_19 = arith.constant 0 : index
      %29 = vector.load %arg6[%c0_18, %c0_19] : memref<16x128xf32, #tpu.memory_space<vmem>>, vector<16x128xf32>
      tpu.vector_store %arg6[%c0_18, %c0_19], %28 {strides = array<i32>} : memref<16x128xf32, #tpu.memory_space<vmem>>, vector<16x128xf32>,
    } else {
    }
    return
  }
  func.func @transform_0(%arg0: i32, %arg1: i32, %arg2: i32) -> (i32, i32) {
    %c0_i32 = arith.constant 0 : i32
    return %arg0, %arg2 : i32, i32
  }
  func.func @transform_1(%arg0: i32, %arg1: i32, %arg2: i32) -> (i32, i32) {
    %c0_i32 = arith.constant 0 : i32
    return %arg2, %arg1 : i32, i32
  }
  func.func @transform_2(%arg0: i32, %arg1: i32, %arg2: i32) -> (i32, i32) {
    %c0_i32 = arith.constant 0 : i32
    %c0_i32_0 = arith.constant 0 : i32
    return %c0_i32, %arg1 : i32, i32
  }
  func.func @transform_3(%arg0: i32, %arg1: i32, %arg2: i32) -> (i32, i32) {
    %c0_i32 = arith.constant 0 : i32
    return %arg0, %arg1 : i32, i32
  }
}

module attributes {stable_mosaic.version = 11 : i64} {
  func.func @_linear_kernel(%arg0: i32, %arg1: i32, %arg2: i32, %arg3: memref<16x128xf32, #tpu.memory_space<vmem>>, %arg4: memref<128x32xf32, #tpu.memory_space<vmem>>, %arg5: memref<1x32xf32, #tpu.memory_space<vmem>>, %arg6: memref<16x32xf32, #tpu.memory_space<vmem>>, %arg7: memref<16x32xf32, #tpu.memory_space<vmem>>, %arg8: memref<16x32xf32, #tpu.memory_space<vmem>>) attributes {dimension_semantics = [#tpu.dimension_semantics<parallel>, #tpu.dimension_semantics<parallel>, #tpu.dimension_semantics<arbitrary>], iteration_bounds = array<i64: 1, 1, 1>, scalar_prefetch = 0 : i64, scratch_operands = 1 : i64, tpu.core_type = #tpu.core_type<tc>, window_params = [{transform_indices = @transform_0, window_bounds = array<i64: 16, 128>}, {transform_indices = @transform_1, window_bounds = array<i64: 128, 32>}, {transform_indices = @transform_2, window_bounds = array<i64: 1, 32>}, {transform_indices = @transform_3, window_bounds = array<i64: 16, 32>}, {transform_indices = @transform_4, window_bounds = array<i64: 16, 32>}]} {
    %c0_i32 = arith.constant 0 : i32
    %0 = arith.cmpi eq, %arg2, %c0_i32 : i32
    %1 = arith.extui %0 : i1 to i32
    %c0_i32_0 = arith.constant 0 : i32
    %2 = arith.cmpi ne, %1, %c0_i32_0 : i32
    scf.if %2 {
      %cst_10 = arith.constant 0.000000e+00 : f32
      %12 = vector.broadcast %cst_10 : f32 to vector<16x32xf32>
      %c0_11 = arith.constant 0 : index
      %c0_12 = arith.constant 0 : index
      %13 = vector.load %arg8[%c0_11, %c0_12] : memref<16x32xf32, #tpu.memory_space<vmem>>, vector<16x32xf32>
      tpu.vector_store %arg8[%c0_11, %c0_12], %12 {strides = array<i32>} : memref<16x32xf32, #tpu.memory_space<vmem>>, vector<16x32xf32>,
    } else {
    }
    %c0 = arith.constant 0 : index
    %c0_1 = arith.constant 0 : index
    %3 = vector.load %arg8[%c0, %c0_1] : memref<16x32xf32, #tpu.memory_space<vmem>>, vector<16x32xf32>
    %c0_2 = arith.constant 0 : index
    %c0_3 = arith.constant 0 : index
    %4 = vector.load %arg3[%c0_2, %c0_3] : memref<16x128xf32, #tpu.memory_space<vmem>>, vector<16x128xf32>
    %c0_4 = arith.constant 0 : index
    %c0_5 = arith.constant 0 : index
    %5 = vector.load %arg4[%c0_4, %c0_5] : memref<128x32xf32, #tpu.memory_space<vmem>>, vector<128x32xf32>
    %cst = arith.constant dense<0.000000e+00> : vector<16x32xf32>
    %6 = tpu.matmul %4, %5, %cst {dimension_numbers = #tpu.dot_dimension_numbers<[1], [0], [0], [1], [0, 0, 1, 1], [], []>, precision = #tpu.contract_precision<fp32>} : vector<16x128xf32>, vector<128x32xf32>, vector<16x32xf32> -> vector<16x32xf32>
    %7 = arith.addf %3, %6 : vector<16x32xf32>
    %c0_6 = arith.constant 0 : index
    %c0_7 = arith.constant 0 : index
    %8 = vector.load %arg8[%c0_6, %c0_7] : memref<16x32xf32, #tpu.memory_space<vmem>>, vector<16x32xf32>
    tpu.vector_store %arg8[%c0_6, %c0_7], %7 {strides = array<i32>} : memref<16x32xf32, #tpu.memory_space<vmem>>, vector<16x32xf32>,
    %c0_i32_8 = arith.constant 0 : i32
    %9 = arith.cmpi eq, %arg2, %c0_i32_8 : i32
    %10 = arith.extui %9 : i1 to i32
    %c0_i32_9 = arith.constant 0 : i32
    %11 = arith.cmpi ne, %10, %c0_i32_9 : i32
    scf.if %11 {
      %c0_10 = arith.constant 0 : index
      %c0_11 = arith.constant 0 : index
      %12 = vector.load %arg8[%c0_10, %c0_11] : memref<16x32xf32, #tpu.memory_space<vmem>>, vector<16x32xf32>
      %c0_12 = arith.constant 0 : index
      %c0_13 = arith.constant 0 : index
      %13 = vector.load %arg5[%c0_12, %c0_13] : memref<1x32xf32, #tpu.memory_space<vmem>>, vector<1x32xf32>
      %14 = vector.broadcast %13 : vector<1x32xf32> to vector<16x32xf32>
      %15 = arith.addf %12, %14 : vector<16x32xf32>
      %c0_14 = arith.constant 0 : index
      %c0_15 = arith.constant 0 : index
      %16 = vector.load %arg6[%c0_14, %c0_15] : memref<16x32xf32, #tpu.memory_space<vmem>>, vector<16x32xf32>
      %17 = arith.addf %15, %16 : vector<16x32xf32>
      %c0_16 = arith.constant 0 : index
      %c0_17 = arith.constant 0 : index
      %18 = vector.load %arg7[%c0_16, %c0_17] : memref<16x32xf32, #tpu.memory_space<vmem>>, vector<16x32xf32>
      tpu.vector_store %arg7[%c0_16, %c0_17], %17 {strides = array<i32>} : memref<16x32xf32, #tpu.memory_space<vmem>>, vector<16x32xf32>,
    } else {
    }
    return
  }
  func.func @transform_0(%arg0: i32, %arg1: i32, %arg2: i32) -> (i32, i32) {
    %c0_i32 = arith.constant 0 : i32
    return %arg0, %arg2 : i32, i32
  }
  func.func @transform_1(%arg0: i32, %arg1: i32, %arg2: i32) -> (i32, i32) {
    %c0_i32 = arith.constant 0 : i32
    return %arg2, %arg1 : i32, i32
  }
  func.func @transform_2(%arg0: i32, %arg1: i32, %arg2: i32) -> (i32, i32) {
    %c0_i32 = arith.constant 0 : i32
    %c0_i32_0 = arith.constant 0 : i32
    return %c0_i32, %arg1 : i32, i32
  }
  func.func @transform_3(%arg0: i32, %arg1: i32, %arg2: i32) -> (i32, i32) {
    %c0_i32 = arith.constant 0 : i32
    return %arg0, %arg1 : i32, i32
  }
  func.func @transform_4(%arg0: i32, %arg1: i32, %arg2: i32) -> (i32, i32) {
    %c0_i32 = arith.constant 0 : i32
    return %arg0, %arg1 : i32, i32
  }
}

</mosaic_0001>

<bundles_post_ra>
// kernel: cross_attention_block_pallas.11
= control target key start
LH: loop header
LB: loop body
LE: loop exit
PB: predicated region body
PF: predicated region fallthrough
CT: control target
= control target key end

     0   :  { %vm16_vm0 = vcmask 261120   ;;  %s118_s0 = inlined_call_operand.vmem [shape: f32[16,32], index: 0, kind: input, shape index: {}]   ;;  %s119_s1 = inlined_call_operand.vmem [shape: f32[1,32], index: 1, kind: input, shape index: {}]   ;;  %s120_s2 = inlined_call_operand.vmem [shape: f32[1,32], index: 2, kind: input, shape index: {}]   ;;  %s121_s3 = inlined_call_operand.vmem [shape: f32[16,32], index: 3, kind: output, shape index: {}]  }
   0x1   :  { %v14_v0 = vld [vmem:[%s118_s0] sm:$0xff]  ;;  %v15_v1 = vld [vmem:[%s118_s0 + $0x8] sm:$0xff] }
   0x2   :  { %v17_v2 = vsel %vm16_vm0, %v14_v0, 0.0  ;;  %v20_v3 = vsel %vm16_vm0, %v15_v1, 0.0  ;;  %v68_v21 = vld [vmem:[%s119_s1] ss:$0 sm:$0xff] }
   0x3   :  { %18 = vadd.xlane.f32.xlu0 %v17_v2  ;;  %v69_v23 = vld [vmem:[%s120_s2] ss:$0 sm:$0xff] }
   0x7   :  { %21 = vadd.xlane.f32.xlu0 %v20_v3 }
  0x90   :  { %v19_v4 = vpop.xlane.xlu0 %18 }
  0x91   :  { %v24_v5 = vmul.f32 0.03125, %v19_v4 }
  0x93   :  { %v26_v6 = vsub.f32 %v14_v0, %v24_v5 }
  0x94   :  { %v22_v7 = vpop.xlane.xlu0 %21 }
  0x95   :  { %v25_v8 = vmul.f32 0.03125, %v22_v7  ;;  %v28_v9 = vmul.f32 %v26_v6, %v26_v6 }
  0x97   :  { %v27_v10 = vsub.f32 %v15_v1, %v25_v8  ;;  %v30_v11 = vsel %vm16_vm0, %v28_v9, 0.0 }
  0x98   :  { %31 = vadd.xlane.f32.xlu1 %v30_v11 }
  0x99   :  { %v29_v12 = vmul.f32 %v27_v10, %v27_v10 }
  0x9b   :  { %v33_v13 = vsel %vm16_vm0, %v29_v12, 0.0 }
  0x9c   :  { %34 = vadd.xlane.f32.xlu1 %v33_v13 }
 0x125   :  { %v32_v14 = vpop.xlane.xlu1 %31 }
 0x126   :  { %v36_v15 = vmul.f32 0.03125, %v32_v14 }
 0x128   :  { %v38_v16 = vadd.f32 1e-05, %v36_v15 }
 0x129   :  { %v35_v17 = vpop.xlane.xlu1 %34 }
 0x12a   :  { %70 = vrsqrt.f32 %v38_v16  ;;  %v37_v18 = vmul.f32 0.03125, %v35_v17 }
 0x12c   :  { %v39_v19 = vadd.f32 1e-05, %v37_v18 }
 0x12e   :  { %72 = vrsqrt.f32 %v39_v19 }
 0x134   :  { %v71_v20 = vpop.eup %70 }
 0x135   :  { %v42_v22 = vmul.f32 %v71_v20, %v26_v6 }
 0x137   :  { %v51_v24 = vmul.f32 %v68_v21, %v42_v22 }
 0x138   :  { %v73_v25 = vpop.eup %72 }
 0x139   :  { %v60_v26 = vadd.f32 %v69_v23, %v51_v24  ;;  %v43_v27 = vmul.f32 %v73_v25, %v27_v10 }
 0x13b   :  { %62 = vst.msk [vmem:[%s121_s3] sm:$0xff] %vm16_vm0, %v60_v26  ;;  %v52_v28 = vmul.f32 %v68_v21, %v43_v27 }
 0x13d   :  { %v61_v29 = vadd.f32 %v69_v23, %v52_v28 }
 0x13f   :  { %63 = vst.msk [vmem:[%s121_s3 + $0x8] sm:$0xff] %vm16_vm0, %v61_v29 }

// kernel: cross_attention_block_pallas.12
= control target key start
LH: loop header
LB: loop body
LE: loop exit
PB: predicated region body
PF: predicated region fallthrough
CT: control target
= control target key end

     0   :  { %vm29_vm0 = vcmask 261120   ;;  %vm18_vm1 = vcmask 785408   ;;  %v751_v46 = vmov 0.0   ;;  %s817_s1 = inlined_call_operand.vmem [shape: f32[32,96], index: 1, kind: input, shape index: {}]   ;;  %s818_s0 = inlined_call_operand.vmem [shape: f32[16,32], index: 0, kind: input, shape index: {}]   ;;  %s819_s2 = inlined_call_operand.vmem [shape: f32[1,96], index: 2, kind: input, shape index: {}]   ;;  %s820_s3 = inlined_call_operand.vmem [shape: f32[16,96], index: 3, kind: output, shape index: {}]  }
   0x1   :  { %v25_v0 = vld [vmem:[%s817_s1] sm:$0xff]  ;;  %v26_v1 = vld [vmem:[%s817_s1 + $0x8] sm:$0xff]  ;;  %v27_v2 = vld [vmem:[%s817_s1 + $0x10] sm:$0xff]  ;;  %20 = vst.msk [vmem:[#allocation2 + $0x8] sm:$0xff] %vm18_vm1, %v751_v46 }
   0x2   :  { %v37_v3 = vand.u32 4294901760, %v25_v0  ;;  %v40_v4 = vand.u32 4294901760, %v26_v1  ;;  %v28_v5 = vld [vmem:[%s817_s1 + $0x18] sm:$0xff]  ;;  %v43_v6 = vand.u32 4294901760, %v27_v2  ;;  %v23_v7 = vld [vmem:[%s818_s0] sm:$0xff]  ;;  %v24_v8 = vld [vmem:[%s818_s0 + $0x8] sm:$0xff] }
   0x3   :  { %v46_v9 = vand.u32 4294901760, %v28_v5  ;;  %v31_v10 = vsel %vm29_vm0, %v23_v7, 0  ;;  %v34_v11 = vsel %vm29_vm0, %v24_v8, 0  ;;  %19 = vst.msk [vmem:[#allocation2] sm:$0xff] %vm18_vm1, %v751_v46  ;;  %v589_v57 = vld [vmem:[%s819_s2] ss:$0 sm:$0xff] }
   0x4   :  { %v692_v12 = vpack.c.bf16 %v40_v4, %v37_v3  ;;  %v790_v13 = vand.u32 4294901760, %v31_v10  ;;  %v792_v14 = vand.u32 4294901760, %v34_v11  ;;  %v127_v15 = vsub.f32 %v25_v0, %v37_v3 }
   0x5   :  { %v696_v16 = vpack.c.bf16 %v46_v9, %v43_v6  ;;  %v134_v17 = vsub.f32 %v26_v1, %v40_v4  ;;  %v141_v18 = vsub.f32 %v27_v2, %v43_v6  ;;  %v148_v19 = vsub.f32 %v28_v5, %v46_v9 }
   0x6   :  { %693 = vmatprep.subr.bf16.mxu1 %v692_v12  ;;  %717 = vmatprep.subr.bf16.mxu0 %v692_v12  ;;  %v106_v20 = vsub.f32 %v31_v10, %v790_v13  ;;  %v116_v21 = vsub.f32 %v34_v11, %v792_v14  ;;  %v128_v22 = vand.u32 4294901760, %v127_v15 }
   0x7   :  { %695 = vmatpush3.bf16.msra.mxu1 %v692_v12  ;;  %719 = vmatpush3.bf16.msra.mxu0 %v692_v12  ;;  %v135_v23 = vand.u32 4294901760, %v134_v17  ;;  %v142_v24 = vand.u32 4294901760, %v141_v18  ;;  %v149_v25 = vand.u32 4294901760, %v148_v19  ;;  %v708_v44 = vpack.c.bf16 %v134_v17, %v127_v15 }
   0x8   :  { %697 = vmatprep.subr.bf16.mxu1 %v696_v16  ;;  %721 = vmatprep.subr.bf16.mxu0 %v696_v16  ;;  %v107_v26 = vand.u32 4294901760, %v106_v20  ;;  %v117_v27 = vand.u32 4294901760, %v116_v21  ;;  %v129_v28 = vsub.f32 %v127_v15, %v128_v22  ;;  %v712_v45 = vpack.c.bf16 %v148_v19, %v141_v18  ;;  %v22_v48 = vld [vmem:[#allocation2 + $0x8] sm:$0xff] }
   0x9   :  { %v136_v29 = vsub.f32 %v134_v17, %v135_v23  ;;  %v724_v30 = vpack.c.bf16 %v135_v23, %v128_v22  ;;  %v143_v31 = vsub.f32 %v141_v18, %v142_v24  ;;  %v150_v32 = vsub.f32 %v148_v19, %v149_v25 }
   0xa   :  { %v108_v33 = vsub.f32 %v106_v20, %v107_v26  ;;  %667 = vmatprep.mubr.f32.mxu0 %v107_v26  ;;  %v118_v34 = vsub.f32 %v116_v21, %v117_v27  ;;  %v130_v35 = vand.u32 4294901760, %v129_v28  ;;  %v728_v43 = vpack.c.bf16 %v149_v25, %v142_v24  ;;  %v21_v52 = vld [vmem:[#allocation2] sm:$0xff] }
   0xb   :  { %699 = vmatpush3.bf16.msra.mxu1 %v696_v16  ;;  %723 = vmatpush3.bf16.msra.mxu0 %v696_v16  ;;  %v137_v36 = vand.u32 4294901760, %v136_v29  ;;  %v144_v37 = vand.u32 4294901760, %v143_v31  ;;  %v151_v38 = vand.u32 4294901760, %v150_v32 }
   0xc   :  { %v109_v39 = vand.u32 4294901760, %v108_v33  ;;  %v119_v40 = vand.u32 4294901760, %v118_v34  ;;  %725 = vmatprep.subr.bf16.mxu0 %v724_v30 }
   0xd   :  { %v700_v41 = vpack.c.bf16 %v137_v36, %v130_v35  ;;  %v704_v42 = vpack.c.bf16 %v151_v38, %v144_v37 }
   0xe   :  { %634 = vmatprep.mubr.f32.mxu1 %v109_v39  ;;  %668 = vmatmul.mubr.f32.vlgmr.msra.gmra.mrb[0].mxu0 %v117_v27 }
   0xf   :  { %635 = vmatmul.mubr.f32.vlgmr.msra.gmra.mrb[0].mxu1 %v119_v40  ;;  %701 = vmatprep.subr.bf16.mxu1 %v700_v41 }
  0x10   :  { %703 = vmatpush3.bf16.msra.mxu1 %v700_v41  ;;  %727 = vmatpush3.bf16.msra.mxu0 %v724_v30 }
  0x11   :  { %705 = vmatprep.subr.bf16.mxu1 %v704_v42  ;;  %729 = vmatprep.subr.bf16.mxu0 %v728_v43 }
  0x12   :  { %645 = vmatprep.mubr.f32.mxu1 %v790_v13  ;;  %678 = vmatprep.mubr.f32.mxu0 %v790_v13 }
  0x14   :  { %707 = vmatpush3.bf16.msra.mxu1 %v704_v42  ;;  %731 = vmatpush3.bf16.msra.mxu0 %v728_v43 }
  0x15   :  { %709 = vmatprep.subr.bf16.mxu1 %v708_v44  ;;  %733 = vmatprep.subr.bf16.mxu0 %v692_v12 }
  0x17   :  { %646 = vmatmul.mubr.f32.vlgmr.msra.gmra.mrb[0].mxu1 %v792_v14  ;;  %679 = vmatmul.mubr.f32.vlgmr.msra.gmra.mrb[0].mxu0 %v792_v14 }
  0x18   :  { %711 = vmatpush3.bf16.msra.mxu1 %v708_v44  ;;  %735 = vmatpush3.bf16.msra.mxu0 %v692_v12 }
  0x19   :  { %713 = vmatprep.subr.bf16.mxu1 %v712_v45  ;;  %737 = vmatprep.subr.bf16.mxu0 %v696_v16 }
  0x1a   :  { %656 = vmatprep.mubr.f32.mxu1 %v106_v20  ;;  %689 = vmatprep.mubr.f32.mxu0 %v790_v13 }
  0x1c   :  { %715 = vmatpush3.bf16.msra.mxu1 %v712_v45  ;;  %739 = vmatpush3.bf16.msra.mxu0 %v696_v16 }
  0x1f   :  { %657 = vmatmul.mubr.f32.vlgmr.msra.gmra.mrb[0].mxu1 %v116_v21  ;;  %690 = vmatmul.mubr.f32.vlgmr.msra.gmra.mrb[0].mxu0 %v792_v14 }
  0xf2   :  { %v658_v47 = vpop.f32.mrb[0].mxu1  ;;  %v691_v49 = vpop.f32.mrb[0].mxu0 }
  0xf3   :  { %v740_v50 = vadd.f32 %v691_v49, %v658_v47  ;;  %v298_v51 = vpop.f32.mrb[1].mxu1  ;;  %v554_v53 = vpop.f32.mrb[1].mxu0 }
  0xf4   :  { %v741_v54 = vadd.f32 %v554_v53, %v298_v51 }
  0xf5   :  { %v565_v55 = vadd.f32 %v740_v50, %v22_v48 }
  0xf6   :  { %v564_v56 = vadd.f32 %v741_v54, %v21_v52 }
  0xf7   :  { %568 = vst.msk [vmem:[#allocation2 + $0x8] sm:$0xff] %vm18_vm1, %v565_v55 }
  0xf8   :  { %567 = vst.msk [vmem:[#allocation2] sm:$0xff] %vm18_vm1, %v564_v56 }
  0xfe   :  { %v573_v58 = vld [vmem:[#allocation2 + $0x8] sm:$0xff] }
  0xff   :  { %v582_v59 = vadd.f32 %v589_v57, %v573_v58  ;;  %v572_v60 = vld [vmem:[#allocation2] sm:$0xff] }
 0x100   :  { %v581_v61 = vadd.f32 %v589_v57, %v572_v60 }
 0x101   :  { %584 = vst.msk [vmem:[%s820_s3 + $0x8] sm:$0xff] %vm18_vm1, %v582_v59 }
 0x102   :  { %583 = vst.msk [vmem:[%s820_s3] sm:$0xff] %vm18_vm1, %v581_v61 }

// kernel: cross_attention_block_pallas.13
= control target key start
LH: loop header
LB: loop body
LE: loop exit
PB: predicated region body
PF: predicated region fallthrough
CT: control target
= control target key end

     0   :  { %s1537_s12 = smov 0   ;;  %s1539_s13 = smov 0   ;;  %s1642_s0 = inlined_call_operand.vmem [shape: f32[2,4,8,8], index: 0, kind: input, shape index: {}]   ;;  %s1643_s1 = inlined_call_operand.vmem [shape: f32[2,4,8,8], index: 1, kind: input, shape index: {}]   ;;  %s1644_s2 = inlined_call_operand.vmem [shape: f32[2,4,8,8], index: 2, kind: input, shape index: {}]   ;;  %s1645_s3 = inlined_call_operand.vmem [shape: f32[2,4,8,8], index: 3, kind: output, shape index: {}]  }
   0x1   :  { %s1541_s14 = smov 0   ;;  %s1543_s15 = smov 0  }
   0x2   :  { %s1545_s16 = smov 0  }
   0x3 LB: > { %s22_s17 = sadd.s32 1, %s1505_s14  ;;  %s25_s18 = sadd.s32 1, %s1509_s15  ;;  %s1513_s16 = sphi %s1545_s16, %s13_s16   ;;  %s1509_s15 = sphi %s1543_s15, %s1649_s15   ;;  %s1505_s14 = sphi %s1541_s14, %s1648_s14   ;;  %s1501_s13 = sphi %s1539_s13, %s1647_s13   ;;  %s1497_s12 = sphi %s1537_s12, %s1646_s12  }
   0x4   : > { %p23_p0 = scmp.ge.s32.totalorder %s22_s17, 4  ;;  %p1314_p1 = scmp.ge.s32.totalorder %s1513_s16, 1 }
   0x5   : > { %p186_p2 = scmp.lt.s32.totalorder %s1513_s16, 9 }
   0x6   : > { %s1651_s17 = smov (%p23_p0, %s22_s17), 0  ;;  %s1653_s18 = smov (!%p23_p0, %s25_s18), %s1509_s15 }
   0x7   : > { %p187_p3 = pnand %p1314_p1, %p186_p2  ;;  %p27_p4 = scmp.ge.s32.totalorder %s1653_s18, 2 }
   0x8   : > { %p232_p5 = scmp.lt.s32.totalorder (!%p187_p3), %s1501_s13, 1  ;;  %p234_p6 = scmp.lt.s32.totalorder (!%p187_p3), %s1497_s12, 3  ;;  %v1515_v0 = vmov (!%p187_p3), 0.0   ;;  %vm1516_vm0 = vmmov (!%p187_p3), 0   ;;  %vm267_vm1 = vcmask (!%p187_p3), 64512   ;;  %v721_v15 = vlaneseq (!%p187_p3) }
   0x9   : > { %s1655_s18 = smov (%p27_p4, %s1653_s18), 0  ;;  %190 = sbr.rel (%p187_p3) target bundleno = 713 (0x2c9), region = 32 }
   0xa   : > { %1349 = vmatprep.subr.mxu0 (!%p187_p3), %v1515_v0  ;;  %1351 = vmatprep.mubr.msk.f32.mxu0 (!%p187_p3), %vm1516_vm0, %v1515_v0  ;;  %v722_v16 = vshrl.u32 (!%p187_p3), %v721_v15, 7  ;;  %v724_v17 = vand.u32 (!%p187_p3), 127, %v721_v15 }
   0xb   : > { %1379 = vmatprep.subr.mxu1 (!%p187_p3), %v1515_v0  ;;  %1381 = vmatprep.mubr.msk.f32.mxu1 (!%p187_p3), %vm1516_vm0, %v1515_v0 }
   0xc   : > { %vm725_vm2 = vcmp.le.s32.totalorder (!%p187_p3), %v724_v17, %v722_v16 }
  0x10   : > { %s1657_s13 = smov (!%p232_p5, %s1501_s13), 1  ;;  %s1659_s12 = smov (!%p234_p6, %s1497_s12), 3 }
  0x11   : > { %s1315_s19 = sshll.u32 %s1657_s13, 2 }
  0x12   : > { %s237_s20 = sadd.s32 %s1315_s19, %s1659_s12 }
  0x13   : > { %s1573_s21 = sshll.u32 %s237_s20, 3 }
  0x14   : > { %s247_s24 = scalar_lea.vmem %s1643_s1, %s1573_s21  ;;  %s239_s27 = scalar_lea.vmem %s1642_s0, %s1573_s21 }
  0x15   : > { %v265_v1 = vld [vmem:[%s247_s24] sm:$0xff]  ;;  %s255_s30 = scalar_lea.vmem %s1644_s2, %s1573_s21  ;;  %s263_s6 = scalar_lea.vmem %s1645_s3, %s1573_s21 }
  0x16   : > { %v264_v2 = vld [vmem:[%s239_s27] sm:$0xff]  ;;  %v272_v3 = vsel %vm267_vm1, %v265_v1, 0 }
  0x17   : > { %v269_v4 = vsel %vm267_vm1, %v264_v2, 0  ;;  %v275_v5 = vand.u32 4294901760, %v272_v3  ;;  %v266_v23 = vld [vmem:[%s255_s30] sm:$0xff] }
  0x18   : > { %v340_v6 = vand.u32 4294901760, %v269_v4  ;;  %v740_v24 = vand.u32 4294901760, %v266_v23 }
  0x19   : > { %1350 = vmatpush3.xpose.msra.mxu0 %v275_v5  ;;  %v352_v7 = vsub.f32 %v272_v3, %v275_v5 }
  0x1a   : > { %v341_v8 = vsub.f32 %v269_v4, %v340_v6  ;;  %1354 = vmatprep.subr.mxu0 %v1515_v0  ;;  %1380 = vmatpush3.msra.mxu1 %v740_v24  ;;  %v817_v28 = vsub.f32 %v266_v23, %v740_v24 }
  0x1b   : > { %v353_v10 = vand.u32 4294901760, %v352_v7  ;;  %1384 = vmatprep.subr.mxu1 %v1515_v0 }
  0x1c   : > { %v342_v9 = vand.u32 4294901760, %v341_v8  ;;  %v818_v32 = vand.u32 4294901760, %v817_v28 }
  0x1d   : > { %v354_v12 = vsub.f32 %v352_v7, %v353_v10 }
  0x1e   : > { %v343_v11 = vsub.f32 %v341_v8, %v342_v9  ;;  %v819_v35 = vsub.f32 %v817_v28, %v818_v32 }
  0x1f   : > { %v355_v14 = vand.u32 4294901760, %v354_v12 }
  0x20   : > { %v344_v13 = vand.u32 4294901760, %v343_v11  ;;  %v820_v38 = vand.u32 4294901760, %v819_v35 }
  0x22   : > { %1352 = vmatmul.mubr.f32.vlgmr.msra.gmra.mrb[0].mxu0 %v344_v13 }
  0x23   : > { %1355 = vmatpush3.xpose.msra.mxu0 %v355_v14  ;;  %1356 = vmatprep.mubr.msk.f32.mxu0 %vm1516_vm0, %v1515_v0 }
  0x24   : > { %1359 = vmatprep.subr.mxu0 %v1515_v0 }
  0x2a   : > { %1357 = vmatmul.mubr.f32.vlgmr.msra.gmra.mrb[0].mxu0 %v340_v6 }
  0x2b   : > { %1360 = vmatpush3.xpose.msra.mxu0 %v352_v7  ;;  %1361 = vmatprep.mubr.msk.f32.mxu0 %vm1516_vm0, %v1515_v0 }
  0x2c   : > { %1364 = vmatprep.subr.mxu0 %v1515_v0 }
  0x32   : > { %1362 = vmatmul.mubr.f32.vlgmr.msra.gmra.mrb[0].mxu0 %v341_v8 }
  0x33   : > { %1365 = vmatpush3.xpose.msra.mxu0 %v275_v5  ;;  %1366 = vmatprep.mubr.msk.f32.mxu0 %vm1516_vm0, %v1515_v0 }
  0x34   : > { %1369 = vmatprep.subr.mxu0 %v1515_v0 }
  0x3a   : > { %1367 = vmatmul.mubr.f32.vlgmr.msra.gmra.mrb[0].mxu0 %v342_v9 }
  0x3b   : > { %1370 = vmatpush3.xpose.msra.mxu0 %v353_v10  ;;  %1371 = vmatprep.mubr.msk.f32.mxu0 %vm1516_vm0, %v1515_v0 }
  0x3c   : > { %1374 = vmatprep.subr.mxu0 %v1515_v0 }
  0x42   : > { %1372 = vmatmul.mubr.f32.vlgmr.msra.gmra.mrb[0].mxu0 %v340_v6 }
  0x43   : > { %1375 = vmatpush3.xpose.msra.mxu0 %v275_v5  ;;  %1376 = vmatprep.mubr.msk.f32.mxu0 %vm1516_vm0, %v1515_v0 }
  0x4a   : > { %1377 = vmatmul.mubr.f32.vlgmr.msra.gmra.mrb[0].mxu0 %v340_v6 }
 0x11d   : > { %v716_v18 = vpop.f32.mrb[0].mxu0 }
 0x11e   : > { %v720_v19 = vmul.f32 0.35355338, %v716_v18  ;;  %v1378_v20 = vpop.f32.mrb[1].mxu0 }
 0x120   : > { %v726_v21 = vsel %vm725_vm2, %v720_v19, -1e+30 }
 0x121   : > { %v727_v22 = vsel %vm267_vm1, %v726_v21, -inf }
 0x122   : > { %728 = vmax.xlane.f32.xlu0 %v727_v22 }
 0x1af   : > { %v729_v25 = vpop.xlane.xlu0 %728 }
 0x1b0   : > { %v730_v26 = vsub.f32 %v726_v21, %v729_v25 }
 0x1b2   : > { %v731_v27 = vmul.f32 1.442695, %v730_v26 }
 0x1b4   : > { %1471 = vpow2.f32 %v731_v27 }
 0x1be   : > { %v1472_v29 = vpop.eup %1471 }
 0x1bf   : > { %v733_v30 = vsel %vm267_vm1, %v1472_v29, 0.0  ;;  %v737_v31 = vsel %vm267_vm1, %v1472_v29, 0 }
 0x1c0   : > { %734 = vadd.xlane.f32.xlu0 %v733_v30  ;;  %v805_v33 = vand.u32 4294901760, %v737_v31 }
 0x1c2   : > { %v806_v34 = vsub.f32 %v737_v31, %v805_v33 }
 0x1c4   : > { %v807_v36 = vand.u32 4294901760, %v806_v34 }
 0x1c6   : > { %v808_v37 = vsub.f32 %v806_v34, %v807_v36 }
 0x1c8   : > { %v809_v39 = vand.u32 4294901760, %v808_v37 }
 0x1ca   : > { %1382 = vmatmul.mubr.f32.vlgmr.msra.gmra.mrb[0].mxu1 %v809_v39 }
 0x1cb   : > { %1385 = vmatpush3.msra.mxu1 %v820_v38  ;;  %1386 = vmatprep.mubr.msk.f32.mxu1 %vm1516_vm0, %v1515_v0 }
 0x1cc   : > { %1389 = vmatprep.subr.mxu1 %v1515_v0 }
 0x1d2   : > { %1387 = vmatmul.mubr.f32.vlgmr.msra.gmra.mrb[0].mxu1 %v805_v33 }
 0x1d3   : > { %1390 = vmatpush3.msra.mxu1 %v817_v28  ;;  %1391 = vmatprep.mubr.msk.f32.mxu1 %vm1516_vm0, %v1515_v0 }
 0x1d4   : > { %1394 = vmatprep.subr.mxu1 %v1515_v0 }
 0x1da   : > { %1392 = vmatmul.mubr.f32.vlgmr.msra.gmra.mrb[0].mxu1 %v806_v34 }
 0x1db   : > { %1395 = vmatpush3.msra.mxu1 %v740_v24  ;;  %1396 = vmatprep.mubr.msk.f32.mxu1 %vm1516_vm0, %v1515_v0 }
 0x1dc   : > { %1399 = vmatprep.subr.mxu1 %v1515_v0 }
 0x1e2   : > { %1397 = vmatmul.mubr.f32.vlgmr.msra.gmra.mrb[0].mxu1 %v807_v36 }
 0x1e3   : > { %1400 = vmatpush3.msra.mxu1 %v818_v32  ;;  %1401 = vmatprep.mubr.msk.f32.mxu1 %vm1516_vm0, %v1515_v0 }
 0x1e4   : > { %1404 = vmatprep.subr.mxu1 %v1515_v0 }
 0x1ea   : > { %1402 = vmatmul.mubr.f32.vlgmr.msra.gmra.mrb[0].mxu1 %v805_v33 }
 0x1eb   : > { %1405 = vmatpush3.msra.mxu1 %v740_v24  ;;  %1406 = vmatprep.mubr.msk.f32.mxu1 %vm1516_vm0, %v1515_v0 }
 0x1f2   : > { %1407 = vmatmul.mubr.f32.vlgmr.msra.gmra.mrb[0].mxu1 %v805_v33 }
 0x24d   : > { %v735_v40 = vpop.xlane.xlu0 %734 }
 0x24e   : > { %1473 = vrcp.f32 %v735_v40 }
 0x258   : > { %v1474_v41 = vpop.eup %1473 }
 0x2c5   : > { %v1181_v42 = vpop.f32.mrb[0].mxu1 }
 0x2c6   : > { %v1186_v43 = vmul.f32 %v1474_v41, %v1181_v42  ;;  %v1408_v44 = vpop.f32.mrb[1].mxu1 }
 0x2c8   : > { %1187 = vst.msk [vmem:[%s263_s6] sm:$0xff] %vm267_vm1, %v1186_v43 }
 0x2c9 PF: > { %s13_s16 = sadd.s32 1, %s1513_s16   ;;  %s1646_s12 = smov %s1505_s14 }
 0x2ca   : > { %p10_p7 = scmp.ge.s32.totalorder %s13_s16, 10   ;;  %s1647_s13 = smov %s1509_s15 }
 0x2cb   : > { %s1648_s14 = smov %s1651_s17  ;;  %s1649_s15 = smov %s1655_s18 }
 0x2cc   :  { %12 = sbr.rel (!%p10_p7) target bundleno = 3 (0x3), region = 68 }

// kernel: cross_attention_block_pallas.14
= control target key start
LH: loop header
LB: loop body
LE: loop exit
PB: predicated region body
PF: predicated region fallthrough
CT: control target
= control target key end

     0   :  { %vm21_vm0 = vcmask 261120   ;;  %v757_v46 = vmov 0.0   ;;  %s836_s1 = inlined_call_operand.vmem [shape: f32[32,32], index: 1, kind: input, shape index: {}]   ;;  %s837_s0 = inlined_call_operand.vmem [shape: f32[16,32], index: 0, kind: input, shape index: {}]   ;;  %s838_s2 = inlined_call_operand.vmem [shape: f32[1,32], index: 2, kind: input, shape index: {}]   ;;  %s839_s3 = inlined_call_operand.vmem [shape: f32[16,32], index: 3, kind: input, shape index: {}]   ;;  %s840_s4 = inlined_call_operand.vmem [shape: f32[16,32], index: 4, kind: output, shape index: {}]  }
   0x1   :  { %v28_v0 = vld [vmem:[%s836_s1] sm:$0xff]  ;;  %v29_v1 = vld [vmem:[%s836_s1 + $0x8] sm:$0xff]  ;;  %v30_v2 = vld [vmem:[%s836_s1 + $0x10] sm:$0xff]  ;;  %23 = vst.msk [vmem:[#allocation2 + $0x8] sm:$0xff] %vm21_vm0, %v757_v46 }
   0x2   :  { %v40_v3 = vand.u32 4294901760, %v28_v0  ;;  %v43_v4 = vand.u32 4294901760, %v29_v1  ;;  %v31_v5 = vld [vmem:[%s836_s1 + $0x18] sm:$0xff]  ;;  %v46_v6 = vand.u32 4294901760, %v30_v2  ;;  %v26_v7 = vld [vmem:[%s837_s0] sm:$0xff]  ;;  %v27_v8 = vld [vmem:[%s837_s0 + $0x8] sm:$0xff] }
   0x3   :  { %v49_v9 = vand.u32 4294901760, %v31_v5  ;;  %v34_v10 = vsel %vm21_vm0, %v26_v7, 0  ;;  %v37_v11 = vsel %vm21_vm0, %v27_v8, 0  ;;  %22 = vst.msk [vmem:[#allocation2] sm:$0xff] %vm21_vm0, %v757_v46  ;;  %v595_v57 = vld [vmem:[%s838_s2] ss:$0 sm:$0xff] }
   0x4   :  { %v698_v12 = vpack.c.bf16 %v43_v4, %v40_v3  ;;  %v803_v13 = vand.u32 4294901760, %v34_v10  ;;  %v805_v14 = vand.u32 4294901760, %v37_v11  ;;  %v130_v15 = vsub.f32 %v28_v0, %v40_v3  ;;  %v586_v59 = vld [vmem:[%s839_s3 + $0x8] sm:$0xff]  ;;  %v585_v62 = vld [vmem:[%s839_s3] sm:$0xff] }
   0x5   :  { %v702_v16 = vpack.c.bf16 %v49_v9, %v46_v6  ;;  %v137_v17 = vsub.f32 %v29_v1, %v43_v4  ;;  %v144_v18 = vsub.f32 %v30_v2, %v46_v6  ;;  %v151_v19 = vsub.f32 %v31_v5, %v49_v9 }
   0x6   :  { %699 = vmatprep.subr.bf16.mxu1 %v698_v12  ;;  %723 = vmatprep.subr.bf16.mxu0 %v698_v12  ;;  %v109_v20 = vsub.f32 %v34_v10, %v803_v13  ;;  %v119_v21 = vsub.f32 %v37_v11, %v805_v14  ;;  %v131_v22 = vand.u32 4294901760, %v130_v15 }
   0x7   :  { %701 = vmatpush3.bf16.msra.mxu1 %v698_v12  ;;  %725 = vmatpush3.bf16.msra.mxu0 %v698_v12  ;;  %v138_v23 = vand.u32 4294901760, %v137_v17  ;;  %v145_v24 = vand.u32 4294901760, %v144_v18  ;;  %v152_v25 = vand.u32 4294901760, %v151_v19  ;;  %v714_v44 = vpack.c.bf16 %v137_v17, %v130_v15 }
   0x8   :  { %703 = vmatprep.subr.bf16.mxu1 %v702_v16  ;;  %727 = vmatprep.subr.bf16.mxu0 %v702_v16  ;;  %v110_v26 = vand.u32 4294901760, %v109_v20  ;;  %v120_v27 = vand.u32 4294901760, %v119_v21  ;;  %v132_v28 = vsub.f32 %v130_v15, %v131_v22  ;;  %v718_v45 = vpack.c.bf16 %v151_v19, %v144_v18  ;;  %v25_v48 = vld [vmem:[#allocation2 + $0x8] sm:$0xff] }
   0x9   :  { %v139_v29 = vsub.f32 %v137_v17, %v138_v23  ;;  %v730_v30 = vpack.c.bf16 %v138_v23, %v131_v22  ;;  %v146_v31 = vsub.f32 %v144_v18, %v145_v24  ;;  %v153_v32 = vsub.f32 %v151_v19, %v152_v25 }
   0xa   :  { %v111_v33 = vsub.f32 %v109_v20, %v110_v26  ;;  %673 = vmatprep.mubr.f32.mxu0 %v110_v26  ;;  %v121_v34 = vsub.f32 %v119_v21, %v120_v27  ;;  %v133_v35 = vand.u32 4294901760, %v132_v28  ;;  %v734_v43 = vpack.c.bf16 %v152_v25, %v145_v24  ;;  %v24_v52 = vld [vmem:[#allocation2] sm:$0xff] }
   0xb   :  { %705 = vmatpush3.bf16.msra.mxu1 %v702_v16  ;;  %729 = vmatpush3.bf16.msra.mxu0 %v702_v16  ;;  %v140_v36 = vand.u32 4294901760, %v139_v29  ;;  %v147_v37 = vand.u32 4294901760, %v146_v31  ;;  %v154_v38 = vand.u32 4294901760, %v153_v32 }
   0xc   :  { %v112_v39 = vand.u32 4294901760, %v111_v33  ;;  %v122_v40 = vand.u32 4294901760, %v121_v34  ;;  %731 = vmatprep.subr.bf16.mxu0 %v730_v30 }
   0xd   :  { %v706_v41 = vpack.c.bf16 %v140_v36, %v133_v35  ;;  %v710_v42 = vpack.c.bf16 %v154_v38, %v147_v37 }
   0xe   :  { %640 = vmatprep.mubr.f32.mxu1 %v112_v39  ;;  %674 = vmatmul.mubr.f32.vlgmr.msra.gmra.mrb[0].mxu0 %v120_v27 }
   0xf   :  { %641 = vmatmul.mubr.f32.vlgmr.msra.gmra.mrb[0].mxu1 %v122_v40  ;;  %707 = vmatprep.subr.bf16.mxu1 %v706_v41 }
  0x10   :  { %709 = vmatpush3.bf16.msra.mxu1 %v706_v41  ;;  %733 = vmatpush3.bf16.msra.mxu0 %v730_v30 }
  0x11   :  { %711 = vmatprep.subr.bf16.mxu1 %v710_v42  ;;  %735 = vmatprep.subr.bf16.mxu0 %v734_v43 }
  0x12   :  { %651 = vmatprep.mubr.f32.mxu1 %v803_v13  ;;  %684 = vmatprep.mubr.f32.mxu0 %v803_v13 }
  0x14   :  { %713 = vmatpush3.bf16.msra.mxu1 %v710_v42  ;;  %737 = vmatpush3.bf16.msra.mxu0 %v734_v43 }
  0x15   :  { %715 = vmatprep.subr.bf16.mxu1 %v714_v44  ;;  %739 = vmatprep.subr.bf16.mxu0 %v698_v12 }
  0x17   :  { %652 = vmatmul.mubr.f32.vlgmr.msra.gmra.mrb[0].mxu1 %v805_v14  ;;  %685 = vmatmul.mubr.f32.vlgmr.msra.gmra.mrb[0].mxu0 %v805_v14 }
  0x18   :  { %717 = vmatpush3.bf16.msra.mxu1 %v714_v44  ;;  %741 = vmatpush3.bf16.msra.mxu0 %v698_v12 }
  0x19   :  { %719 = vmatprep.subr.bf16.mxu1 %v718_v45  ;;  %743 = vmatprep.subr.bf16.mxu0 %v702_v16 }
  0x1a   :  { %662 = vmatprep.mubr.f32.mxu1 %v109_v20  ;;  %695 = vmatprep.mubr.f32.mxu0 %v803_v13 }
  0x1c   :  { %721 = vmatpush3.bf16.msra.mxu1 %v718_v45  ;;  %745 = vmatpush3.bf16.msra.mxu0 %v702_v16 }
  0x1f   :  { %663 = vmatmul.mubr.f32.vlgmr.msra.gmra.mrb[0].mxu1 %v119_v21  ;;  %696 = vmatmul.mubr.f32.vlgmr.msra.gmra.mrb[0].mxu0 %v805_v14 }
  0xf2   :  { %v664_v47 = vpop.f32.mrb[0].mxu1  ;;  %v697_v49 = vpop.f32.mrb[0].mxu0 }
  0xf3   :  { %v746_v50 = vadd.f32 %v697_v49, %v664_v47  ;;  %v301_v51 = vpop.f32.mrb[1].mxu1  ;;  %v557_v53 = vpop.f32.mrb[1].mxu0 }
  0xf4   :  { %v747_v54 = vadd.f32 %v557_v53, %v301_v51 }
  0xf5   :  { %v568_v55 = vadd.f32 %v746_v50, %v25_v48 }
  0xf6   :  { %v567_v56 = vadd.f32 %v747_v54, %v24_v52 }
  0xf7   :  { %570 = vst.msk [vmem:[#allocation2 + $0x8] sm:$0xff] %vm21_vm0, %v568_v55 }
  0xf8   :  { %569 = vst.msk [vmem:[#allocation2] sm:$0xff] %vm21_vm0, %v567_v56 }
  0xfe   :  { %v575_v58 = vld [vmem:[#allocation2 + $0x8] sm:$0xff] }
  0xff   :  { %v584_v60 = vadd.f32 %v595_v57, %v575_v58  ;;  %v574_v61 = vld [vmem:[#allocation2] sm:$0xff] }
 0x100   :  { %v583_v63 = vadd.f32 %v595_v57, %v574_v61 }
 0x101   :  { %v588_v0 = vadd.f32 %v586_v59, %v584_v60 }
 0x102   :  { %v587_v1 = vadd.f32 %v585_v62, %v583_v63 }
 0x103   :  { %590 = vst.msk [vmem:[%s840_s4 + $0x8] sm:$0xff] %vm21_vm0, %v588_v0 }
 0x104   :  { %589 = vst.msk [vmem:[%s840_s4] sm:$0xff] %vm21_vm0, %v587_v1 }

// kernel: cross_attention_block_pallas.15
= control target key start
LH: loop header
LB: loop body
LE: loop exit
PB: predicated region body
PF: predicated region fallthrough
CT: control target
= control target key end

     0   :  { %vm18_vm0 = vcmask 261120   ;;  %v750_v46 = vmov 0.0   ;;  %s818_s1 = inlined_call_operand.vmem [shape: f32[32,32], index: 1, kind: input, shape index: {}]   ;;  %s819_s0 = inlined_call_operand.vmem [shape: f32[16,32], index: 0, kind: input, shape index: {}]   ;;  %s820_s2 = inlined_call_operand.vmem [shape: f32[1,32], index: 2, kind: input, shape index: {}]   ;;  %s821_s3 = inlined_call_operand.vmem [shape: f32[16,32], index: 3, kind: output, shape index: {}]  }
   0x1   :  { %v25_v0 = vld [vmem:[%s818_s1] sm:$0xff]  ;;  %v26_v1 = vld [vmem:[%s818_s1 + $0x8] sm:$0xff]  ;;  %v27_v2 = vld [vmem:[%s818_s1 + $0x10] sm:$0xff]  ;;  %20 = vst.msk [vmem:[#allocation2 + $0x8] sm:$0xff] %vm18_vm0, %v750_v46 }
   0x2   :  { %v37_v3 = vand.u32 4294901760, %v25_v0  ;;  %v40_v4 = vand.u32 4294901760, %v26_v1  ;;  %v28_v5 = vld [vmem:[%s818_s1 + $0x18] sm:$0xff]  ;;  %v43_v6 = vand.u32 4294901760, %v27_v2  ;;  %v23_v7 = vld [vmem:[%s819_s0] sm:$0xff]  ;;  %v24_v8 = vld [vmem:[%s819_s0 + $0x8] sm:$0xff] }
   0x3   :  { %v46_v9 = vand.u32 4294901760, %v28_v5  ;;  %v31_v10 = vsel %vm18_vm0, %v23_v7, 0  ;;  %v34_v11 = vsel %vm18_vm0, %v24_v8, 0  ;;  %19 = vst.msk [vmem:[#allocation2] sm:$0xff] %vm18_vm0, %v750_v46  ;;  %v588_v57 = vld [vmem:[%s820_s2] ss:$0 sm:$0xff] }
   0x4   :  { %v691_v12 = vpack.c.bf16 %v40_v4, %v37_v3  ;;  %v791_v13 = vand.u32 4294901760, %v31_v10  ;;  %v793_v14 = vand.u32 4294901760, %v34_v11  ;;  %v127_v15 = vsub.f32 %v25_v0, %v37_v3 }
   0x5   :  { %v695_v16 = vpack.c.bf16 %v46_v9, %v43_v6  ;;  %v134_v17 = vsub.f32 %v26_v1, %v40_v4  ;;  %v141_v18 = vsub.f32 %v27_v2, %v43_v6  ;;  %v148_v19 = vsub.f32 %v28_v5, %v46_v9 }
   0x6   :  { %692 = vmatprep.subr.bf16.mxu1 %v691_v12  ;;  %716 = vmatprep.subr.bf16.mxu0 %v691_v12  ;;  %v106_v20 = vsub.f32 %v31_v10, %v791_v13  ;;  %v116_v21 = vsub.f32 %v34_v11, %v793_v14  ;;  %v128_v22 = vand.u32 4294901760, %v127_v15 }
   0x7   :  { %694 = vmatpush3.bf16.msra.mxu1 %v691_v12  ;;  %718 = vmatpush3.bf16.msra.mxu0 %v691_v12  ;;  %v135_v23 = vand.u32 4294901760, %v134_v17  ;;  %v142_v24 = vand.u32 4294901760, %v141_v18  ;;  %v149_v25 = vand.u32 4294901760, %v148_v19  ;;  %v707_v44 = vpack.c.bf16 %v134_v17, %v127_v15 }
   0x8   :  { %696 = vmatprep.subr.bf16.mxu1 %v695_v16  ;;  %720 = vmatprep.subr.bf16.mxu0 %v695_v16  ;;  %v107_v26 = vand.u32 4294901760, %v106_v20  ;;  %v117_v27 = vand.u32 4294901760, %v116_v21  ;;  %v129_v28 = vsub.f32 %v127_v15, %v128_v22  ;;  %v711_v45 = vpack.c.bf16 %v148_v19, %v141_v18  ;;  %v22_v48 = vld [vmem:[#allocation2 + $0x8] sm:$0xff] }
   0x9   :  { %v136_v29 = vsub.f32 %v134_v17, %v135_v23  ;;  %v723_v30 = vpack.c.bf16 %v135_v23, %v128_v22  ;;  %v143_v31 = vsub.f32 %v141_v18, %v142_v24  ;;  %v150_v32 = vsub.f32 %v148_v19, %v149_v25 }
   0xa   :  { %v108_v33 = vsub.f32 %v106_v20, %v107_v26  ;;  %666 = vmatprep.mubr.f32.mxu0 %v107_v26  ;;  %v118_v34 = vsub.f32 %v116_v21, %v117_v27  ;;  %v130_v35 = vand.u32 4294901760, %v129_v28  ;;  %v727_v43 = vpack.c.bf16 %v149_v25, %v142_v24  ;;  %v21_v52 = vld [vmem:[#allocation2] sm:$0xff] }
   0xb   :  { %698 = vmatpush3.bf16.msra.mxu1 %v695_v16  ;;  %722 = vmatpush3.bf16.msra.mxu0 %v695_v16  ;;  %v137_v36 = vand.u32 4294901760, %v136_v29  ;;  %v144_v37 = vand.u32 4294901760, %v143_v31  ;;  %v151_v38 = vand.u32 4294901760, %v150_v32 }
   0xc   :  { %v109_v39 = vand.u32 4294901760, %v108_v33  ;;  %v119_v40 = vand.u32 4294901760, %v118_v34  ;;  %724 = vmatprep.subr.bf16.mxu0 %v723_v30 }
   0xd   :  { %v699_v41 = vpack.c.bf16 %v137_v36, %v130_v35  ;;  %v703_v42 = vpack.c.bf16 %v151_v38, %v144_v37 }
   0xe   :  { %633 = vmatprep.mubr.f32.mxu1 %v109_v39  ;;  %667 = vmatmul.mubr.f32.vlgmr.msra.gmra.mrb[0].mxu0 %v117_v27 }
   0xf   :  { %634 = vmatmul.mubr.f32.vlgmr.msra.gmra.mrb[0].mxu1 %v119_v40  ;;  %700 = vmatprep.subr.bf16.mxu1 %v699_v41 }
  0x10   :  { %702 = vmatpush3.bf16.msra.mxu1 %v699_v41  ;;  %726 = vmatpush3.bf16.msra.mxu0 %v723_v30 }
  0x11   :  { %704 = vmatprep.subr.bf16.mxu1 %v703_v42  ;;  %728 = vmatprep.subr.bf16.mxu0 %v727_v43 }
  0x12   :  { %644 = vmatprep.mubr.f32.mxu1 %v791_v13  ;;  %677 = vmatprep.mubr.f32.mxu0 %v791_v13 }
  0x14   :  { %706 = vmatpush3.bf16.msra.mxu1 %v703_v42  ;;  %730 = vmatpush3.bf16.msra.mxu0 %v727_v43 }
  0x15   :  { %708 = vmatprep.subr.bf16.mxu1 %v707_v44  ;;  %732 = vmatprep.subr.bf16.mxu0 %v691_v12 }
  0x17   :  { %645 = vmatmul.mubr.f32.vlgmr.msra.gmra.mrb[0].mxu1 %v793_v14  ;;  %678 = vmatmul.mubr.f32.vlgmr.msra.gmra.mrb[0].mxu0 %v793_v14 }
  0x18   :  { %710 = vmatpush3.bf16.msra.mxu1 %v707_v44  ;;  %734 = vmatpush3.bf16.msra.mxu0 %v691_v12 }
  0x19   :  { %712 = vmatprep.subr.bf16.mxu1 %v711_v45  ;;  %736 = vmatprep.subr.bf16.mxu0 %v695_v16 }
  0x1a   :  { %655 = vmatprep.mubr.f32.mxu1 %v106_v20  ;;  %688 = vmatprep.mubr.f32.mxu0 %v791_v13 }
  0x1c   :  { %714 = vmatpush3.bf16.msra.mxu1 %v711_v45  ;;  %738 = vmatpush3.bf16.msra.mxu0 %v695_v16 }
  0x1f   :  { %656 = vmatmul.mubr.f32.vlgmr.msra.gmra.mrb[0].mxu1 %v116_v21  ;;  %689 = vmatmul.mubr.f32.vlgmr.msra.gmra.mrb[0].mxu0 %v793_v14 }
  0xf2   :  { %v657_v47 = vpop.f32.mrb[0].mxu1  ;;  %v690_v49 = vpop.f32.mrb[0].mxu0 }
  0xf3   :  { %v739_v50 = vadd.f32 %v690_v49, %v657_v47  ;;  %v298_v51 = vpop.f32.mrb[1].mxu1  ;;  %v554_v53 = vpop.f32.mrb[1].mxu0 }
  0xf4   :  { %v740_v54 = vadd.f32 %v554_v53, %v298_v51 }
  0xf5   :  { %v565_v55 = vadd.f32 %v739_v50, %v22_v48 }
  0xf6   :  { %v564_v56 = vadd.f32 %v740_v54, %v21_v52 }
  0xf7   :  { %567 = vst.msk [vmem:[#allocation2 + $0x8] sm:$0xff] %vm18_vm0, %v565_v55 }
  0xf8   :  { %566 = vst.msk [vmem:[#allocation2] sm:$0xff] %vm18_vm0, %v564_v56 }
  0xfe   :  { %v572_v58 = vld [vmem:[#allocation2 + $0x8] sm:$0xff] }
  0xff   :  { %v581_v59 = vadd.f32 %v588_v57, %v572_v58  ;;  %v571_v60 = vld [vmem:[#allocation2] sm:$0xff] }
 0x100   :  { %v580_v61 = vadd.f32 %v588_v57, %v571_v60 }
 0x101   :  { %583 = vst.msk [vmem:[%s821_s3 + $0x8] sm:$0xff] %vm18_vm0, %v581_v59 }
 0x102   :  { %582 = vst.msk [vmem:[%s821_s3] sm:$0xff] %vm18_vm0, %v580_v61 }

// kernel: cross_attention_block_pallas.16
= control target key start
LH: loop header
LB: loop body
LE: loop exit
PB: predicated region body
PF: predicated region fallthrough
CT: control target
= control target key end

     0   :  { %vm35_vm0 = vcmask 261120   ;;  %vm18_vm1 = vcmask 523264   ;;  %v899_v60 = vmov 0.0   ;;  %s1035_s1 = inlined_call_operand.vmem [shape: f32[32,64], index: 1, kind: input, shape index: {}]   ;;  %s1036_s0 = inlined_call_operand.vmem [shape: f32[32,32], index: 0, kind: input, shape index: {}]   ;;  %s1037_s2 = inlined_call_operand.vmem [shape: f32[1,64], index: 2, kind: input, shape index: {}]   ;;  %s1038_s3 = inlined_call_operand.vmem [shape: f32[32,64], index: 3, kind: output, shape index: {}]  }
   0x1   :  { %v31_v0 = vld [vmem:[%s1035_s1] sm:$0xff]  ;;  %v32_v1 = vld [vmem:[%s1035_s1 + $0x8] sm:$0xff]  ;;  %v33_v2 = vld [vmem:[%s1035_s1 + $0x10] sm:$0xff]  ;;  %20 = vst.msk [vmem:[#allocation2 + $0x8] sm:$0xff] %vm18_vm1, %v899_v60 }
   0x2   :  { %v49_v3 = vand.u32 4294901760, %v31_v0  ;;  %v52_v4 = vand.u32 4294901760, %v32_v1  ;;  %v34_v5 = vld [vmem:[%s1035_s1 + $0x18] sm:$0xff]  ;;  %v55_v6 = vand.u32 4294901760, %v33_v2  ;;  %v27_v7 = vld [vmem:[%s1036_s0] sm:$0xff]  ;;  %v28_v8 = vld [vmem:[%s1036_s0 + $0x8] sm:$0xff] }
   0x3   :  { %v58_v9 = vand.u32 4294901760, %v34_v5  ;;  %v37_v10 = vsel %vm35_vm0, %v27_v7, 0  ;;  %v40_v11 = vsel %vm35_vm0, %v28_v8, 0  ;;  %v29_v12 = vld [vmem:[%s1036_s0 + $0x10] sm:$0xff]  ;;  %v30_v13 = vld [vmem:[%s1036_s0 + $0x18] sm:$0xff]  ;;  %19 = vst.msk [vmem:[#allocation2] sm:$0xff] %vm18_vm1, %v899_v60 }
   0x4   :  { %v946_v14 = vpack.c.bf16 %v52_v4, %v49_v3  ;;  %v948_v15 = vand.u32 4294901760, %v37_v10  ;;  %v950_v16 = vand.u32 4294901760, %v40_v11  ;;  %v159_v17 = vsub.f32 %v31_v0, %v49_v3  ;;  %21 = vst.msk [vmem:[#allocation2 + $0x10] sm:$0xff] %vm18_vm1, %v899_v60  ;;  %22 = vst.msk [vmem:[#allocation2 + $0x18] sm:$0xff] %vm18_vm1, %v899_v60 }
   0x5   :  { %v952_v18 = vpack.c.bf16 %v58_v9, %v55_v6  ;;  %v166_v19 = vsub.f32 %v32_v1, %v52_v4  ;;  %v43_v20 = vsel %vm35_vm0, %v29_v12, 0  ;;  %v46_v21 = vsel %vm35_vm0, %v30_v13, 0 }
   0x6   :  { %831 = vmatprep.subr.bf16.mxu1 %v946_v14  ;;  %855 = vmatprep.subr.bf16.mxu0 %v946_v14  ;;  %v959_v22 = vsub.f32 %v37_v10, %v948_v15  ;;  %v962_v23 = vsub.f32 %v40_v11, %v950_v16  ;;  %v160_v24 = vand.u32 4294901760, %v159_v17  ;;  %v964_v25 = vand.u32 4294901760, %v43_v20 }
   0x7   :  { %833 = vmatpush3.bf16.msra.mxu1 %v946_v14  ;;  %857 = vmatpush3.bf16.msra.mxu0 %v946_v14  ;;  %v167_v26 = vand.u32 4294901760, %v166_v19  ;;  %v968_v27 = vand.u32 4294901760, %v46_v21  ;;  %v173_v28 = vsub.f32 %v33_v2, %v55_v6  ;;  %v180_v29 = vsub.f32 %v34_v5, %v58_v9 }
   0x8   :  { %835 = vmatprep.subr.bf16.mxu1 %v952_v18  ;;  %859 = vmatprep.subr.bf16.mxu0 %v952_v18  ;;  %v119_v30 = vand.u32 4294901760, %v959_v22  ;;  %v129_v31 = vand.u32 4294901760, %v962_v23  ;;  %v161_v32 = vsub.f32 %v159_v17, %v160_v24  ;;  %v975_v33 = vsub.f32 %v43_v20, %v964_v25  ;;  %v24_v62 = vld [vmem:[#allocation2 + $0x8] sm:$0xff] }
   0x9   :  { %v168_v34 = vsub.f32 %v166_v19, %v167_v26  ;;  %v862_v35 = vpack.c.bf16 %v167_v26, %v160_v24  ;;  %v978_v36 = vsub.f32 %v46_v21, %v968_v27  ;;  %v174_v37 = vand.u32 4294901760, %v173_v28 }
   0xa   :  { %v120_v38 = vsub.f32 %v959_v22, %v119_v30  ;;  %796 = vmatprep.mubr.f32.mxu0 %v119_v30  ;;  %v130_v39 = vsub.f32 %v962_v23, %v129_v31  ;;  %v162_v40 = vand.u32 4294901760, %v161_v32  ;;  %v139_v41 = vand.u32 4294901760, %v975_v33  ;;  %v23_v2 = vld [vmem:[#allocation2] sm:$0xff] }
   0xb   :  { %837 = vmatpush3.bf16.msra.mxu1 %v952_v18  ;;  %861 = vmatpush3.bf16.msra.mxu0 %v952_v18  ;;  %v169_v42 = vand.u32 4294901760, %v168_v34  ;;  %v149_v43 = vand.u32 4294901760, %v978_v36  ;;  %v175_v44 = vsub.f32 %v173_v28, %v174_v37  ;;  %v181_v45 = vand.u32 4294901760, %v180_v29  ;;  %v26_v8 = vld [vmem:[#allocation2 + $0x18] sm:$0xff]  ;;  %v25_v12 = vld [vmem:[#allocation2 + $0x10] sm:$0xff] }
   0xc   :  { %v121_v46 = vand.u32 4294901760, %v120_v38  ;;  %v131_v47 = vand.u32 4294901760, %v130_v39  ;;  %863 = vmatprep.subr.bf16.mxu0 %v862_v35  ;;  %v140_v48 = vsub.f32 %v975_v33, %v139_v41  ;;  %v846_v58 = vpack.c.bf16 %v166_v19, %v159_v17  ;;  %v697_v17 = vld [vmem:[%s1037_s2] ss:$0 sm:$0xff] }
   0xd   :  { %v838_v49 = vpack.c.bf16 %v169_v42, %v162_v40  ;;  %v150_v50 = vsub.f32 %v978_v36, %v149_v43  ;;  %v176_v51 = vand.u32 4294901760, %v175_v44  ;;  %v182_v52 = vsub.f32 %v180_v29, %v181_v45 }
   0xe   :  { %754 = vmatprep.mubr.f32.mxu1 %v121_v46  ;;  %797 = vmatmul.mubr.f32.vlgmr.msra.gmra.mrb[0].mxu0 %v129_v31  ;;  %v141_v53 = vand.u32 4294901760, %v140_v48  ;;  %v866_v54 = vpack.c.bf16 %v181_v45, %v174_v37  ;;  %v850_v59 = vpack.c.bf16 %v180_v29, %v173_v28 }
   0xf   :  { %755 = vmatmul.mubr.f32.vlgmr.msra.gmra.mrb[0].mxu1 %v131_v47  ;;  %839 = vmatprep.subr.bf16.mxu1 %v838_v49  ;;  %v151_v55 = vand.u32 4294901760, %v150_v50  ;;  %v183_v56 = vand.u32 4294901760, %v182_v52 }
  0x10   :  { %841 = vmatpush3.bf16.msra.mxu1 %v838_v49  ;;  %865 = vmatpush3.bf16.msra.mxu0 %v862_v35 }
  0x11   :  { %757 = vmatprep.mubr.f32.mxu1 %v141_v53  ;;  %799 = vmatprep.mubr.f32.mxu0 %v139_v41  ;;  %v842_v57 = vpack.c.bf16 %v183_v56, %v176_v51 }
  0x12   :  { %800 = vmatmul.mubr.f32.gmra.mrb[2].mxu0 %v149_v43  ;;  %867 = vmatprep.subr.bf16.mxu0 %v866_v54 }
  0x13   :  { %758 = vmatmul.mubr.f32.gmra.mrb[2].mxu1 %v151_v55  ;;  %843 = vmatprep.subr.bf16.mxu1 %v842_v57 }
  0x14   :  { %845 = vmatpush3.bf16.msra.mxu1 %v842_v57  ;;  %869 = vmatpush3.bf16.msra.mxu0 %v866_v54 }
  0x15   :  { %768 = vmatprep.mubr.f32.mxu1 %v948_v15  ;;  %810 = vmatprep.mubr.f32.mxu0 %v948_v15 }
  0x16   :  { %847 = vmatprep.subr.bf16.mxu1 %v846_v58  ;;  %871 = vmatprep.subr.bf16.mxu0 %v946_v14 }
  0x17   :  { %769 = vmatmul.mubr.f32.vlgmr.msra.gmra.mrb[0].mxu1 %v950_v16  ;;  %811 = vmatmul.mubr.f32.vlgmr.msra.gmra.mrb[0].mxu0 %v950_v16 }
  0x18   :  { %849 = vmatpush3.bf16.msra.mxu1 %v846_v58  ;;  %873 = vmatpush3.bf16.msra.mxu0 %v946_v14 }
  0x19   :  { %771 = vmatprep.mubr.f32.mxu1 %v964_v25  ;;  %813 = vmatprep.mubr.f32.mxu0 %v964_v25 }
  0x1a   :  { %851 = vmatprep.subr.bf16.mxu1 %v850_v59  ;;  %875 = vmatprep.subr.bf16.mxu0 %v952_v18 }
  0x1b   :  { %772 = vmatmul.mubr.f32.gmra.mrb[2].mxu1 %v968_v27  ;;  %814 = vmatmul.mubr.f32.gmra.mrb[2].mxu0 %v968_v27 }
  0x1c   :  { %853 = vmatpush3.bf16.msra.mxu1 %v850_v59  ;;  %877 = vmatpush3.bf16.msra.mxu0 %v952_v18 }
  0x1d   :  { %782 = vmatprep.mubr.f32.mxu1 %v959_v22  ;;  %824 = vmatprep.mubr.f32.mxu0 %v948_v15 }
  0x1f   :  { %783 = vmatmul.mubr.f32.vlgmr.msra.gmra.mrb[0].mxu1 %v962_v23  ;;  %825 = vmatmul.mubr.f32.vlgmr.msra.gmra.mrb[0].mxu0 %v950_v16 }
  0x20   :  { %785 = vmatprep.mubr.f32.mxu1 %v975_v33  ;;  %827 = vmatprep.mubr.f32.mxu0 %v964_v25 }
  0x23   :  { %786 = vmatmul.mubr.f32.gmra.mrb[2].mxu1 %v978_v36  ;;  %828 = vmatmul.mubr.f32.gmra.mrb[2].mxu0 %v968_v27 }
  0xf2   :  { %v784_v61 = vpop.f32.mrb[0].mxu1  ;;  %v826_v63 = vpop.f32.mrb[0].mxu0 }
  0xf3   :  { %v878_v0 = vadd.f32 %v826_v63, %v784_v61  ;;  %v342_v1 = vpop.f32.mrb[1].mxu1  ;;  %v640_v3 = vpop.f32.mrb[1].mxu0 }
  0xf4   :  { %v879_v4 = vadd.f32 %v640_v3, %v342_v1 }
  0xf5   :  { %v663_v5 = vadd.f32 %v878_v0, %v24_v62 }
  0xf6   :  { %v662_v6 = vadd.f32 %v879_v4, %v23_v2  ;;  %v787_v7 = vpop.f32.mrb[2].mxu1  ;;  %v829_v9 = vpop.f32.mrb[2].mxu0 }
  0xf7   :  { %668 = vst.msk [vmem:[#allocation2 + $0x8] sm:$0xff] %vm18_vm1, %v663_v5  ;;  %v880_v10 = vadd.f32 %v829_v9, %v787_v7  ;;  %v356_v11 = vpop.f32.mrb[3].mxu1  ;;  %v652_v13 = vpop.f32.mrb[3].mxu0 }
  0xf8   :  { %667 = vst.msk [vmem:[#allocation2] sm:$0xff] %vm18_vm1, %v662_v6  ;;  %v881_v14 = vadd.f32 %v652_v13, %v356_v11 }
  0xf9   :  { %v665_v15 = vadd.f32 %v880_v10, %v26_v8 }
  0xfa   :  { %v664_v16 = vadd.f32 %v881_v14, %v25_v12 }
  0xfb   :  { %670 = vst.msk [vmem:[#allocation2 + $0x18] sm:$0xff] %vm18_vm1, %v665_v15 }
  0xfc   :  { %669 = vst.msk [vmem:[#allocation2 + $0x10] sm:$0xff] %vm18_vm1, %v664_v16 }
  0xfe   :  { %v675_v18 = vld [vmem:[#allocation2 + $0x8] sm:$0xff] }
  0xff   :  { %v686_v19 = vadd.f32 %v697_v17, %v675_v18  ;;  %v674_v20 = vld [vmem:[#allocation2] sm:$0xff] }
 0x100   :  { %v685_v21 = vadd.f32 %v697_v17, %v674_v20 }
 0x101   :  { %690 = vst.msk [vmem:[%s1038_s3 + $0x8] sm:$0xff] %vm18_vm1, %v686_v19 }
 0x102   :  { %689 = vst.msk [vmem:[%s1038_s3] sm:$0xff] %vm18_vm1, %v685_v21  ;;  %v677_v22 = vld [vmem:[#allocation2 + $0x18] sm:$0xff] }
 0x103   :  { %v688_v23 = vadd.f32 %v697_v17, %v677_v22  ;;  %v676_v24 = vld [vmem:[#allocation2 + $0x10] sm:$0xff] }
 0x104   :  { %v687_v25 = vadd.f32 %v697_v17, %v676_v24 }
 0x105   :  { %692 = vst.msk [vmem:[%s1038_s3 + $0x18] sm:$0xff] %vm18_vm1, %v688_v23 }
 0x106   :  { %691 = vst.msk [vmem:[%s1038_s3 + $0x10] sm:$0xff] %vm18_vm1, %v687_v25 }

// kernel: cross_attention_block_pallas.17
= control target key start
LH: loop header
LB: loop body
LE: loop exit
PB: predicated region body
PF: predicated region fallthrough
CT: control target
= control target key end

     0   :  { %s1650_s12 = smov 0   ;;  %s1652_s13 = smov 0   ;;  %s1764_s0 = inlined_call_operand.vmem [shape: f32[2,4,8,8], index: 0, kind: input, shape index: {}]   ;;  %s1765_s1 = inlined_call_operand.vmem [shape: f32[2,4,16,8], index: 1, kind: input, shape index: {}]   ;;  %s1766_s2 = inlined_call_operand.vmem [shape: f32[2,4,16,8], index: 2, kind: input, shape index: {}]   ;;  %s1767_s3 = inlined_call_operand.vmem [shape: f32[2,4,8,8], index: 3, kind: output, shape index: {}]  }
   0x1   :  { %s1654_s14 = smov 0   ;;  %s1656_s15 = smov 0  }
   0x2   :  { %s1658_s16 = smov 0  }
   0x3 LB: > { %s22_s17 = sadd.s32 1, %s1617_s14  ;;  %s25_s18 = sadd.s32 1, %s1621_s15  ;;  %s1625_s16 = sphi %s1658_s16, %s13_s16   ;;  %s1621_s15 = sphi %s1656_s15, %s1771_s15   ;;  %s1617_s14 = sphi %s1654_s14, %s1770_s14   ;;  %s1613_s13 = sphi %s1652_s13, %s1769_s13   ;;  %s1609_s12 = sphi %s1650_s12, %s1768_s12  }
   0x4   : > { %p23_p0 = scmp.ge.s32.totalorder %s22_s17, 4  ;;  %p1352_p1 = scmp.ge.s32.totalorder %s1625_s16, 1 }
   0x5   : > { %p188_p2 = scmp.lt.s32.totalorder %s1625_s16, 9 }
   0x6   : > { %s1773_s17 = smov (%p23_p0, %s22_s17), 0  ;;  %s1775_s18 = smov (!%p23_p0, %s25_s18), %s1621_s15 }
   0x7   : > { %p189_p3 = pnand %p1352_p1, %p188_p2  ;;  %p27_p4 = scmp.ge.s32.totalorder %s1775_s18, 2 }
   0x8   : > { %p236_p5 = scmp.lt.s32.totalorder (!%p189_p3), %s1613_s13, 1  ;;  %p238_p6 = scmp.lt.s32.totalorder (!%p189_p3), %s1609_s12, 3  ;;  %v1627_v0 = vmov (!%p189_p3), 0.0|0.0   ;;  %vm1628_vm0 = vmmov (!%p189_p3), 0   ;;  %v1629_v1 = vmov (!%p189_p3), 0.0   ;;  %vm275_vm1 = vcmask (!%p189_p3), 64512  }
   0x9   : > { %s1777_s18 = smov (%p27_p4, %s1775_s18), 0  ;;  %192 = sbr.rel (%p189_p3) target bundleno = 715 (0x2cb), region = 32 }
   0xa   : > { %1488 = vmatprep.subr.bf16.mxu0 (!%p189_p3), %v1627_v0  ;;  %1412 = vmatprep.mubr.msk.f32.mxu0 (!%p189_p3), %vm1628_vm0, %v1629_v1  ;;  %vm745_vm2 = vcmask (!%p189_p3), 130048  }
   0xb   : > { %1485 = vmatprep.subr.bf16.mxu1 (!%p189_p3), %v1627_v0  ;;  %1405 = vmatprep.mubr.msk.f32.mxu1 (!%p189_p3), %vm1628_vm0, %v1629_v1 }
  0x10   : > { %s1779_s13 = smov (!%p236_p5, %s1613_s13), 1  ;;  %s1781_s12 = smov (!%p238_p6, %s1609_s12), 3 }
  0x11   : > { %s1356_s19 = sshll.u32 %s1779_s13, 3  ;;  %s1353_s20 = sshll.u32 %s1779_s13, 2 }
  0x12   : > { %s1355_s21 = sshll.u32 %s1781_s12, 1  ;;  %s1686_s22 = sadd.s32 %s1353_s20, %s1781_s12 }
  0x13   : > { %s1688_s23 = sadd.s32 %s1356_s19, %s1355_s21  ;;  %s1354_s24 = sshll.u32 %s1686_s22, 3 }
  0x14   : > { %s1357_s25 = sshll.u32 %s1688_s23, 3  ;;  %s243_s28 = scalar_lea.vmem %s1764_s0, %s1354_s24 }
  0x15   : > { %s252_s4 = scalar_lea.vmem %s1765_s1, %s1357_s25  ;;  %v270_v2 = vld [vmem:[%s243_s28] sm:$0xff]  ;;  %s261_s7 = scalar_lea.vmem %s1766_s2, %s1357_s25 }
  0x16   : > { %v271_v3 = vld [vmem:[%s252_s4] sm:$0xff]  ;;  %v272_v4 = vld [vmem:[%s252_s4 + $0x8] sm:$0xff]  ;;  %v277_v5 = vsel %vm275_vm1, %v270_v2, 0  ;;  %s269_s10 = scalar_lea.vmem %s1767_s3, %s1354_s24 }
  0x17   : > { %v280_v6 = vsel %vm275_vm1, %v271_v3, 0  ;;  %v283_v7 = vsel %vm275_vm1, %v272_v4, 0  ;;  %v352_v8 = vand.u32 4294901760, %v277_v5  ;;  %v273_v34 = vld [vmem:[%s261_s7] sm:$0xff]  ;;  %v274_v35 = vld [vmem:[%s261_s7 + $0x8] sm:$0xff] }
  0x18   : > { %v286_v9 = vand.u32 4294901760, %v280_v6  ;;  %v289_v10 = vand.u32 4294901760, %v283_v7  ;;  %v759_v36 = vand.u32 4294901760, %v273_v34  ;;  %v762_v37 = vand.u32 4294901760, %v274_v35 }
  0x19   : > { %v353_v11 = vsub.f32 %v277_v5, %v352_v8 }
  0x1a   : > { %v364_v12 = vsub.f32 %v280_v6, %v286_v9  ;;  %v371_v13 = vsub.f32 %v283_v7, %v289_v10  ;;  %v1486_v14 = vpack.c.bf16 %v289_v10, %v286_v9  ;;  %v1504_v38 = vpack.c.bf16 %v762_v37, %v759_v36 }
  0x1b   : > { %v354_v15 = vand.u32 4294901760, %v353_v11  ;;  %v837_v39 = vsub.f32 %v273_v34, %v759_v36  ;;  %v844_v40 = vsub.f32 %v274_v35, %v762_v37 }
  0x1c   : > { %v365_v16 = vand.u32 4294901760, %v364_v12  ;;  %v372_v17 = vand.u32 4294901760, %v371_v13  ;;  %1487 = vmatpush3.bf16.xpose.msra.mxu1 %v1486_v14  ;;  %v1492_v25 = vpack.c.bf16 %v371_v13, %v364_v12 }
  0x1d   : > { %v355_v18 = vsub.f32 %v353_v11, %v354_v15  ;;  %1503 = vmatprep.subr.bf16.mxu1 %v1627_v0  ;;  %v838_v41 = vand.u32 4294901760, %v837_v39  ;;  %v845_v42 = vand.u32 4294901760, %v844_v40  ;;  %v1510_v48 = vpack.c.bf16 %v844_v40, %v837_v39 }
  0x1e   : > { %v366_v19 = vsub.f32 %v364_v12, %v365_v16  ;;  %v373_v20 = vsub.f32 %v371_v13, %v372_v17  ;;  %v1498_v26 = vpack.c.bf16 %v372_v17, %v365_v16 }
  0x1f   : > { %v356_v21 = vand.u32 4294901760, %v355_v18  ;;  %v839_v43 = vsub.f32 %v837_v39, %v838_v41  ;;  %v846_v44 = vsub.f32 %v844_v40, %v845_v42  ;;  %v1516_v49 = vpack.c.bf16 %v845_v42, %v838_v41 }
  0x20   : > { %v367_v22 = vand.u32 4294901760, %v366_v19  ;;  %v374_v23 = vand.u32 4294901760, %v373_v20 }
  0x21   : > { %v840_v45 = vand.u32 4294901760, %v839_v43  ;;  %v847_v46 = vand.u32 4294901760, %v846_v44 }
  0x22   : > { %v1489_v24 = vpack.c.bf16 %v374_v23, %v367_v22 }
  0x23   : > { %1406 = vmatmul.mubr.f32.vlgmr.msra.gmra.mrb[0].mxu1 %v356_v21  ;;  %v1507_v47 = vpack.c.bf16 %v847_v46, %v840_v45 }
  0x24   : > { %1490 = vmatpush3.bf16.xpose.msra.mxu0 %v1489_v24  ;;  %1447 = vmatprep.mubr.msk.f32.mxu1 %vm1628_vm0, %v1629_v1 }
  0x25   : > { %1491 = vmatprep.subr.bf16.mxu0 %v1627_v0  ;;  %1505 = vmatpush3.bf16.msra.mxu1 %v1504_v38 }
  0x26   : > { %1506 = vmatprep.subr.bf16.mxu1 %v1627_v0 }
  0x2b   : > { %1413 = vmatmul.mubr.f32.vlgmr.msra.gmra.mrb[0].mxu0 %v352_v8 }
  0x2c   : > { %1493 = vmatpush3.bf16.xpose.msra.mxu0 %v1492_v25  ;;  %1419 = vmatprep.mubr.msk.f32.mxu0 %vm1628_vm0, %v1629_v1 }
  0x2d   : > { %1494 = vmatprep.subr.bf16.mxu0 %v1627_v0 }
  0x33   : > { %1420 = vmatmul.mubr.f32.vlgmr.msra.gmra.mrb[0].mxu0 %v353_v11 }
  0x34   : > { %1496 = vmatpush3.bf16.xpose.msra.mxu0 %v1486_v14  ;;  %1426 = vmatprep.mubr.msk.f32.mxu0 %vm1628_vm0, %v1629_v1 }
  0x35   : > { %1497 = vmatprep.subr.bf16.mxu0 %v1627_v0 }
  0x3b   : > { %1427 = vmatmul.mubr.f32.vlgmr.msra.gmra.mrb[0].mxu0 %v354_v15 }
  0x3c   : > { %1499 = vmatpush3.bf16.xpose.msra.mxu0 %v1498_v26  ;;  %1433 = vmatprep.mubr.msk.f32.mxu0 %vm1628_vm0, %v1629_v1 }
  0x3d   : > { %1500 = vmatprep.subr.bf16.mxu0 %v1627_v0 }
  0x43   : > { %1434 = vmatmul.mubr.f32.vlgmr.msra.gmra.mrb[0].mxu0 %v352_v8 }
  0x44   : > { %1502 = vmatpush3.bf16.xpose.msra.mxu0 %v1486_v14  ;;  %1440 = vmatprep.mubr.msk.f32.mxu0 %vm1628_vm0, %v1629_v1 }
  0x4b   : > { %1441 = vmatmul.mubr.f32.vlgmr.msra.gmra.mrb[0].mxu0 %v352_v8 }
  0xf6   : > { %v358_v27 = vpop.f32.mrb[0].mxu1 }
  0xf7   : > { %v1407_v28 = vpop.f32.mrb[1].mxu1 }
 0x11e   : > { %v740_v29 = vpop.f32.mrb[0].mxu0 }
 0x11f   : > { %v1521_v30 = vadd.f32 %v740_v29, %v358_v27  ;;  %v1442_v31 = vpop.f32.mrb[1].mxu0 }
 0x121   : > { %v744_v32 = vmul.f32 0.35355338, %v1521_v30 }
 0x123   : > { %v746_v33 = vsel %vm745_vm2, %v744_v32, -inf }
 0x124   : > { %747 = vmax.xlane.f32.xlu0 %v746_v33 }
 0x1b1   : > { %v748_v50 = vpop.xlane.xlu0 %747 }
 0x1b2   : > { %v749_v51 = vsub.f32 %v744_v32, %v748_v50 }
 0x1b4   : > { %v750_v52 = vmul.f32 1.442695, %v749_v51 }
 0x1b6   : > { %1583 = vpow2.f32 %v750_v52 }
 0x1c0   : > { %v1584_v53 = vpop.eup %1583 }
 0x1c1   : > { %v756_v54 = vsel %vm745_vm2, %v1584_v53, 0  ;;  %v752_v55 = vsel %vm745_vm2, %v1584_v53, 0.0 }
 0x1c2   : > { %v825_v56 = vand.u32 4294901760, %v756_v54  ;;  %753 = vadd.xlane.f32.xlu0 %v752_v55 }
 0x1c4   : > { %v826_v57 = vsub.f32 %v756_v54, %v825_v56 }
 0x1c6   : > { %v827_v58 = vand.u32 4294901760, %v826_v57 }
 0x1c8   : > { %v828_v59 = vsub.f32 %v826_v57, %v827_v58 }
 0x1ca   : > { %v829_v60 = vand.u32 4294901760, %v828_v59 }
 0x1cc   : > { %1448 = vmatmul.mubr.f32.vlgmr.msra.gmra.mrb[2].mxu1 %v829_v60 }
 0x1cd   : > { %1508 = vmatpush3.bf16.msra.mxu1 %v1507_v47  ;;  %1454 = vmatprep.mubr.msk.f32.mxu1 %vm1628_vm0, %v1629_v1 }
 0x1ce   : > { %1509 = vmatprep.subr.bf16.mxu1 %v1627_v0 }
 0x1d4   : > { %1455 = vmatmul.mubr.f32.vlgmr.msra.gmra.mrb[2].mxu1 %v825_v56 }
 0x1d5   : > { %1511 = vmatpush3.bf16.msra.mxu1 %v1510_v48  ;;  %1461 = vmatprep.mubr.msk.f32.mxu1 %vm1628_vm0, %v1629_v1 }
 0x1d6   : > { %1512 = vmatprep.subr.bf16.mxu1 %v1627_v0 }
 0x1dc   : > { %1462 = vmatmul.mubr.f32.vlgmr.msra.gmra.mrb[2].mxu1 %v826_v57 }
 0x1dd   : > { %1514 = vmatpush3.bf16.msra.mxu1 %v1504_v38  ;;  %1468 = vmatprep.mubr.msk.f32.mxu1 %vm1628_vm0, %v1629_v1 }
 0x1de   : > { %1515 = vmatprep.subr.bf16.mxu1 %v1627_v0 }
 0x1e4   : > { %1469 = vmatmul.mubr.f32.vlgmr.msra.gmra.mrb[2].mxu1 %v827_v58 }
 0x1e5   : > { %1517 = vmatpush3.bf16.msra.mxu1 %v1516_v49  ;;  %1475 = vmatprep.mubr.msk.f32.mxu1 %vm1628_vm0, %v1629_v1 }
 0x1e6   : > { %1518 = vmatprep.subr.bf16.mxu1 %v1627_v0 }
 0x1ec   : > { %1476 = vmatmul.mubr.f32.vlgmr.msra.gmra.mrb[2].mxu1 %v825_v56 }
 0x1ed   : > { %1520 = vmatpush3.bf16.msra.mxu1 %v1504_v38  ;;  %1482 = vmatprep.mubr.msk.f32.mxu1 %vm1628_vm0, %v1629_v1 }
 0x1f4   : > { %1483 = vmatmul.mubr.f32.vlgmr.msra.gmra.mrb[2].mxu1 %v825_v56 }
 0x24f   : > { %v754_v61 = vpop.xlane.xlu0 %753 }
 0x250   : > { %1585 = vrcp.f32 %v754_v61 }
 0x25a   : > { %v1586_v62 = vpop.eup %1585 }
 0x2c7   : > { %v1213_v63 = vpop.f32.mrb[2].mxu1 }
 0x2c8   : > { %v1218_v2 = vmul.f32 %v1586_v62, %v1213_v63  ;;  %v1484_v3 = vpop.f32.mrb[3].mxu1 }
 0x2ca   : > { %1219 = vst.msk [vmem:[%s269_s10] sm:$0xff] %vm275_vm1, %v1218_v2 }
 0x2cb PF: > { %s13_s16 = sadd.s32 1, %s1625_s16   ;;  %s1768_s12 = smov %s1617_s14 }
 0x2cc   : > { %p10_p7 = scmp.ge.s32.totalorder %s13_s16, 10   ;;  %s1769_s13 = smov %s1621_s15 }
 0x2cd   : > { %s1770_s14 = smov %s1773_s17  ;;  %s1771_s15 = smov %s1777_s18 }
 0x2ce   :  { %12 = sbr.rel (!%p10_p7) target bundleno = 3 (0x3), region = 68 }

// kernel: cross_attention_block_pallas.20
= control target key start
LH: loop header
LB: loop body
LE: loop exit
PB: predicated region body
PF: predicated region fallthrough
CT: control target
= control target key end

     0   :  { %vm28_vm0 = vcmask 261120   ;;  %s829_s1 = inlined_call_operand.vmem [shape: f32[32,128], index: 1, kind: input, shape index: {}]   ;;  %s830_s0 = inlined_call_operand.vmem [shape: f32[16,32], index: 0, kind: input, shape index: {}]   ;;  %s831_s2 = inlined_call_operand.vmem [shape: f32[1,128], index: 2, kind: input, shape index: {}]   ;;  %s832_s3 = inlined_call_operand.vmem [shape: f32[16,128], index: 3, kind: output, shape index: {}]  }
   0x1   :  { %v24_v0 = vld [vmem:[%s829_s1] sm:$0xff]  ;;  %v25_v1 = vld [vmem:[%s829_s1 + $0x8] sm:$0xff]  ;;  %v26_v2 = vld [vmem:[%s829_s1 + $0x10] sm:$0xff] }
   0x2   :  { %v36_v3 = vand.u32 4294901760, %v24_v0  ;;  %v39_v4 = vand.u32 4294901760, %v25_v1  ;;  %v27_v5 = vld [vmem:[%s829_s1 + $0x18] sm:$0xff]  ;;  %v42_v6 = vand.u32 4294901760, %v26_v2  ;;  %v22_v7 = vld [vmem:[%s830_s0] sm:$0xff]  ;;  %v23_v8 = vld [vmem:[%s830_s0 + $0x8] sm:$0xff] }
   0x3   :  { %v45_v9 = vand.u32 4294901760, %v27_v5  ;;  %v30_v10 = vsel %vm28_vm0, %v22_v7, 0  ;;  %v33_v11 = vsel %vm28_vm0, %v23_v8, 0  ;;  %v605_v48 = vld [vmem:[%s831_s2] ss:$0 sm:$0xff] }
   0x4   :  { %v708_v12 = vpack.c.bf16 %v39_v4, %v36_v3  ;;  %v808_v13 = vand.u32 4294901760, %v30_v10  ;;  %v810_v14 = vand.u32 4294901760, %v33_v11  ;;  %v126_v15 = vsub.f32 %v24_v0, %v36_v3 }
   0x5   :  { %v712_v16 = vpack.c.bf16 %v45_v9, %v42_v6  ;;  %v133_v17 = vsub.f32 %v25_v1, %v39_v4  ;;  %v140_v18 = vsub.f32 %v26_v2, %v42_v6  ;;  %v147_v19 = vsub.f32 %v27_v5, %v45_v9 }
   0x6   :  { %709 = vmatprep.subr.bf16.mxu1 %v708_v12  ;;  %733 = vmatprep.subr.bf16.mxu0 %v708_v12  ;;  %v105_v20 = vsub.f32 %v30_v10, %v808_v13  ;;  %v115_v21 = vsub.f32 %v33_v11, %v810_v14  ;;  %v127_v22 = vand.u32 4294901760, %v126_v15 }
   0x7   :  { %711 = vmatpush3.bf16.msra.mxu1 %v708_v12  ;;  %735 = vmatpush3.bf16.msra.mxu0 %v708_v12  ;;  %v134_v23 = vand.u32 4294901760, %v133_v17  ;;  %v141_v24 = vand.u32 4294901760, %v140_v18  ;;  %v148_v25 = vand.u32 4294901760, %v147_v19  ;;  %v724_v44 = vpack.c.bf16 %v133_v17, %v126_v15 }
   0x8   :  { %713 = vmatprep.subr.bf16.mxu1 %v712_v16  ;;  %737 = vmatprep.subr.bf16.mxu0 %v712_v16  ;;  %v106_v26 = vand.u32 4294901760, %v105_v20  ;;  %v116_v27 = vand.u32 4294901760, %v115_v21  ;;  %v128_v28 = vsub.f32 %v126_v15, %v127_v22  ;;  %v728_v45 = vpack.c.bf16 %v147_v19, %v140_v18 }
   0x9   :  { %v135_v29 = vsub.f32 %v133_v17, %v134_v23  ;;  %v740_v30 = vpack.c.bf16 %v134_v23, %v127_v22  ;;  %v142_v31 = vsub.f32 %v140_v18, %v141_v24  ;;  %v149_v32 = vsub.f32 %v147_v19, %v148_v25 }
   0xa   :  { %v107_v33 = vsub.f32 %v105_v20, %v106_v26  ;;  %683 = vmatprep.mubr.f32.mxu0 %v106_v26  ;;  %v117_v34 = vsub.f32 %v115_v21, %v116_v27  ;;  %v129_v35 = vand.u32 4294901760, %v128_v28  ;;  %v744_v43 = vpack.c.bf16 %v148_v25, %v141_v24 }
   0xb   :  { %715 = vmatpush3.bf16.msra.mxu1 %v712_v16  ;;  %739 = vmatpush3.bf16.msra.mxu0 %v712_v16  ;;  %v136_v36 = vand.u32 4294901760, %v135_v29  ;;  %v143_v37 = vand.u32 4294901760, %v142_v31  ;;  %v150_v38 = vand.u32 4294901760, %v149_v32 }
   0xc   :  { %v108_v39 = vand.u32 4294901760, %v107_v33  ;;  %v118_v40 = vand.u32 4294901760, %v117_v34  ;;  %741 = vmatprep.subr.bf16.mxu0 %v740_v30 }
   0xd   :  { %v716_v41 = vpack.c.bf16 %v136_v36, %v129_v35  ;;  %v720_v42 = vpack.c.bf16 %v150_v38, %v143_v37 }
   0xe   :  { %650 = vmatprep.mubr.f32.mxu1 %v108_v39  ;;  %684 = vmatmul.mubr.f32.vlgmr.msra.gmra.mrb[0].mxu0 %v116_v27 }
   0xf   :  { %651 = vmatmul.mubr.f32.vlgmr.msra.gmra.mrb[0].mxu1 %v118_v40  ;;  %717 = vmatprep.subr.bf16.mxu1 %v716_v41 }
  0x10   :  { %719 = vmatpush3.bf16.msra.mxu1 %v716_v41  ;;  %743 = vmatpush3.bf16.msra.mxu0 %v740_v30 }
  0x11   :  { %721 = vmatprep.subr.bf16.mxu1 %v720_v42  ;;  %745 = vmatprep.subr.bf16.mxu0 %v744_v43 }
  0x12   :  { %661 = vmatprep.mubr.f32.mxu1 %v808_v13  ;;  %694 = vmatprep.mubr.f32.mxu0 %v808_v13 }
  0x14   :  { %723 = vmatpush3.bf16.msra.mxu1 %v720_v42  ;;  %747 = vmatpush3.bf16.msra.mxu0 %v744_v43 }
  0x15   :  { %725 = vmatprep.subr.bf16.mxu1 %v724_v44  ;;  %749 = vmatprep.subr.bf16.mxu0 %v708_v12 }
  0x17   :  { %662 = vmatmul.mubr.f32.vlgmr.msra.gmra.mrb[0].mxu1 %v810_v14  ;;  %695 = vmatmul.mubr.f32.vlgmr.msra.gmra.mrb[0].mxu0 %v810_v14 }
  0x18   :  { %727 = vmatpush3.bf16.msra.mxu1 %v724_v44  ;;  %751 = vmatpush3.bf16.msra.mxu0 %v708_v12 }
  0x19   :  { %729 = vmatprep.subr.bf16.mxu1 %v728_v45  ;;  %753 = vmatprep.subr.bf16.mxu0 %v712_v16 }
  0x1a   :  { %672 = vmatprep.mubr.f32.mxu1 %v105_v20  ;;  %705 = vmatprep.mubr.f32.mxu0 %v808_v13 }
  0x1c   :  { %731 = vmatpush3.bf16.msra.mxu1 %v728_v45  ;;  %755 = vmatpush3.bf16.msra.mxu0 %v712_v16 }
  0x1f   :  { %673 = vmatmul.mubr.f32.vlgmr.msra.gmra.mrb[0].mxu1 %v115_v21  ;;  %706 = vmatmul.mubr.f32.vlgmr.msra.gmra.mrb[0].mxu0 %v810_v14 }
  0xf2   :  { %v674_v46 = vpop.f32.mrb[0].mxu1  ;;  %v707_v47 = vpop.f32.mrb[0].mxu0 }
  0xf3   :  { %v756_v49 = vadd.f32 %v707_v47, %v674_v46  ;;  %v297_v50 = vpop.f32.mrb[1].mxu1  ;;  %v553_v51 = vpop.f32.mrb[1].mxu0 }
  0xf4   :  { %v757_v52 = vadd.f32 %v553_v51, %v297_v50 }
  0xf5   :  { %v580_v53 = vadd.f32 %v756_v49, %v605_v48 }
  0xf6   :  { %v579_v54 = vadd.f32 %v757_v52, %v605_v48 }
  0xf7   :  { %v584_v55 = vmul.f32 0.044715, %v580_v53  ;;  %v582_v3 = vmul.f32 0.5, %v580_v53 }
  0xf8   :  { %v583_v56 = vmul.f32 0.044715, %v579_v54  ;;  %v581_v5 = vmul.f32 0.5, %v579_v54 }
  0xf9   :  { %v586_v57 = vmul.f32 %v584_v55, %v580_v53 }
  0xfa   :  { %v585_v58 = vmul.f32 %v583_v56, %v579_v54 }
  0xfb   :  { %v588_v59 = vmul.f32 %v586_v57, %v580_v53 }
  0xfc   :  { %v587_v60 = vmul.f32 %v585_v58, %v579_v54 }
  0xfd   :  { %v590_v61 = vadd.f32 %v588_v59, %v580_v53 }
  0xfe   :  { %v589_v62 = vadd.f32 %v587_v60, %v579_v54 }
  0xff   :  { %v592_v63 = vmul.f32 0.7978846, %v590_v61 }
 0x100   :  { %v591_v0 = vmul.f32 0.7978846, %v589_v62 }
 0x101   :  { %766 = vtanh.f32 %v592_v63 }
 0x102   :  { %768 = vtanh.f32 %v591_v0 }
 0x10b   :  { %v767_v1 = vpop.eup %766 }
 0x10c   :  { %v769_v2 = vpop.eup %768  ;;  %v596_v4 = vadd.f32 1.0, %v767_v1 }
 0x10d   :  { %v595_v6 = vadd.f32 1.0, %v769_v2 }
 0x10e   :  { %v598_v7 = vmul.f32 %v596_v4, %v582_v3 }
 0x10f   :  { %v597_v8 = vmul.f32 %v595_v6, %v581_v5 }
 0x110   :  { %600 = vst [vmem:[%s832_s3 + $0x8] sm:$0xff] %v598_v7 }
 0x111   :  { %599 = vst [vmem:[%s832_s3] sm:$0xff] %v597_v8 }

// kernel: cross_attention_block_pallas.21
= control target key start
LH: loop header
LB: loop body
LE: loop exit
PB: predicated region body
PF: predicated region fallthrough
CT: control target
= control target key end

     0   :  { %s1695_s0 = inlined_call_operand.vmem [shape: f32[16,128], index: 0, kind: input, shape index: {}]   ;;  %s1696_s1 = inlined_call_operand.vmem [shape: f32[128,32], index: 1, kind: input, shape index: {}]   ;;  %s1697_s2 = inlined_call_operand.vmem [shape: f32[1,32], index: 2, kind: input, shape index: {}]   ;;  %s1698_s3 = inlined_call_operand.vmem [shape: f32[16,32], index: 3, kind: input, shape index: {}]   ;;  %s1699_s4 = inlined_call_operand.hbm [shape: f32[16,32], index: 4, kind: output, shape index: {}]  }
   0x1   :  { %v29_v0 = vld [vmem:[%s1696_s1] sm:$0xff]  ;;  %v30_v1 = vld [vmem:[%s1696_s1 + $0x8] sm:$0xff]  ;;  %v31_v2 = vld [vmem:[%s1696_s1 + $0x10] sm:$0xff] }
   0x2   :  { %v46_v3 = vand.u32 4294901760, %v29_v0  ;;  %v49_v4 = vand.u32 4294901760, %v30_v1  ;;  %v1360_v5 = vld [vmem:[%s1696_s1 + $0x18] sm:$0xff]  ;;  %v52_v6 = vand.u32 4294901760, %v31_v2  ;;  %v1365_v7 = vld [vmem:[%s1696_s1 + $0x20] sm:$0xff]  ;;  %v1370_v8 = vld [vmem:[%s1696_s1 + $0x28] sm:$0xff] }
   0x3   :  { %v55_v9 = vand.u32 4294901760, %v1360_v5  ;;  %v58_v11 = vand.u32 4294901760, %v1365_v7  ;;  %v61_v12 = vand.u32 4294901760, %v1370_v8  ;;  %v1382_v14 = vld [vmem:[%s1696_s1 + $0x30] sm:$0xff]  ;;  %v1387_v15 = vld [vmem:[%s1696_s1 + $0x38] sm:$0xff]  ;;  %v27_v16 = vld [vmem:[%s1695_s0] sm:$0xff] }
   0x4   :  { %v1373_v10 = vpack.c.bf16 %v49_v4, %v46_v3  ;;  %v1396_v17 = vand.u32 4294901760, %v27_v16 }
   0x5   :  { %v1377_v13 = vpack.c.bf16 %v55_v9, %v52_v6 }
   0x6   :  { %1090 = vmatprep.subr.bf16.mxu1 %v1373_v10  ;;  %1186 = vmatprep.subr.bf16.mxu0 %v1373_v10 }
   0x7   :  { %1092 = vmatpush3.bf16.msra.mxu1 %v1373_v10  ;;  %1188 = vmatpush3.bf16.msra.mxu0 %v1373_v10 }
   0x8   :  { %9 = vsyncpa [#allocation4], 0  ;;  %1094 = vmatprep.subr.bf16.mxu1 %v1377_v13  ;;  %1190 = vmatprep.subr.bf16.mxu0 %v1377_v13  ;;  %v1404_v18 = vpack.c.bf16 %v61_v12, %v58_v11  ;;  %v64_v19 = vand.u32 4294901760, %v1382_v14  ;;  %v67_v20 = vand.u32 4294901760, %v1387_v15  ;;  %v1411_v21 = vld [vmem:[%s1696_s1 + $0x40] sm:$0xff]  ;;  %v1416_v22 = vld [vmem:[%s1696_s1 + $0x48] sm:$0xff]  ;;  %v1419_v23 = vsub.f32 %v27_v16, %v1396_v17 }
   0x9   :  { %v70_v26 = vand.u32 4294901760, %v1411_v21  ;;  %v73_v27 = vand.u32 4294901760, %v1416_v22  ;;  %v1437_v28 = vld [vmem:[%s1696_s1 + $0x50] sm:$0xff]  ;;  %v1442_v29 = vld [vmem:[%s1696_s1 + $0x58] sm:$0xff]  ;;  %v28_v33 = vld [vmem:[%s1695_s0 + $0x8] sm:$0xff]  ;;  %v1470_v38 = vsub.f32 %v29_v0, %v46_v3  ;;  %v1472_v39 = vsub.f32 %v30_v1, %v49_v4  ;;  %s1320_s27 = smov [#allocation3]  }
   0xa   :  { %v128_v24 = vand.u32 4294901760, %v1419_v23  ;;  %v1430_v25 = vpack.c.bf16 %v67_v20, %v64_v19  ;;  %v76_v31 = vand.u32 4294901760, %v1437_v28  ;;  %v79_v35 = vand.u32 4294901760, %v1442_v29  ;;  %v1463_v36 = vld [vmem:[%s1696_s1 + $0x60] sm:$0xff]  ;;  %v1468_v37 = vld [vmem:[%s1696_s1 + $0x68] sm:$0xff]  ;;  %v1483_v43 = vld [vmem:[%s1696_s1 + $0x70] sm:$0xff] }
   0xb   :  { %1096 = vmatpush3.bf16.msra.mxu1 %v1377_v13  ;;  %1192 = vmatpush3.bf16.msra.mxu0 %v1377_v13  ;;  %v1457_v34 = vpack.c.bf16 %v73_v27, %v70_v26  ;;  %v1474_v40 = vand.u32 4294901760, %v28_v33  ;;  %v82_v41 = vand.u32 4294901760, %v1463_v36  ;;  %v85_v42 = vand.u32 4294901760, %v1468_v37  ;;  %v1488_v44 = vld [vmem:[%s1696_s1 + $0x78] sm:$0xff]  ;;  %s759_s28 = sshll.u32 %s1320_s27, 4  ;;  %s760_s28 = int_to_ptr.vmem [resolvable:$true] %s759_s28 }
   0xc   :  { %1098 = vmatprep.subr.bf16.mxu1 %v1404_v18  ;;  %1194 = vmatprep.subr.bf16.mxu0 %v1404_v18  ;;  %v129_v30 = vsub.f32 %v1419_v23, %v128_v24  ;;  %v1490_v45 = vsub.f32 %v31_v2, %v52_v6  ;;  %v1498_v46 = vpack.c.bf16 %v79_v35, %v76_v31  ;;  %v149_v47 = vand.u32 4294901760, %v1470_v38  ;;  %p1300_p1 = scmp.lt.s32.totalorder %s760_s28, %s760_s28 }
   0xd   :  { %1016 = vmatprep.mubr.f32.mxu0 %v128_v24  ;;  %v156_v48 = vand.u32 4294901760, %v1472_v39  ;;  %v1503_v49 = vsub.f32 %v1360_v5, %v55_v9  ;;  %v88_v50 = vand.u32 4294901760, %v1483_v43  ;;  %v91_v51 = vand.u32 4294901760, %v1488_v44 }
   0xe   :  { %v130_v32 = vand.u32 4294901760, %v129_v30  ;;  %v1508_v52 = vsub.f32 %v28_v33, %v1474_v40  ;;  %v1516_v53 = vpack.c.bf16 %v85_v42, %v82_v41  ;;  %v163_v54 = vand.u32 4294901760, %v1490_v45 }
   0xf   :  { %1100 = vmatpush3.bf16.msra.mxu1 %v1404_v18  ;;  %1196 = vmatpush3.bf16.msra.mxu0 %v1404_v18  ;;  %v1522_v55 = vsub.f32 %v1365_v7, %v58_v11  ;;  %v150_v56 = vsub.f32 %v1470_v38, %v149_v47  ;;  %v157_v57 = vsub.f32 %v1472_v39, %v156_v48  ;;  %v170_v58 = vand.u32 4294901760, %v1503_v49 }
  0x10   :  { %1102 = vmatprep.subr.bf16.mxu1 %v1430_v25  ;;  %1198 = vmatprep.subr.bf16.mxu0 %v1430_v25  ;;  %v1532_v59 = vsub.f32 %v1370_v8, %v61_v12  ;;  %v1538_v60 = vpack.c.bf16 %v91_v51, %v88_v50  ;;  %v138_v61 = vand.u32 4294901760, %v1508_v52  ;;  %v164_v62 = vsub.f32 %v1490_v45, %v163_v54 }
  0x11   :  { %911 = vmatprep.mubr.f32.mxu1 %v130_v32  ;;  %v177_v63 = vand.u32 4294901760, %v1522_v55  ;;  %v1548_v0 = vsub.f32 %v1382_v14, %v64_v19  ;;  %v1553_v1 = vsub.f32 %v1387_v15, %v67_v20  ;;  %v151_v2 = vand.u32 4294901760, %v150_v56 }
  0x12   :  { %v158_v3 = vand.u32 4294901760, %v157_v57  ;;  %v171_v4 = vsub.f32 %v1503_v49, %v170_v58  ;;  %v184_v5 = vand.u32 4294901760, %v1532_v59  ;;  %v1217_v6 = vpack.c.bf16 %v156_v48, %v149_v47 }
  0x13   :  { %1104 = vmatpush3.bf16.msra.mxu1 %v1430_v25  ;;  %1200 = vmatpush3.bf16.msra.mxu0 %v1430_v25  ;;  %v139_v7 = vsub.f32 %v1508_v52, %v138_v61  ;;  %v1563_v8 = vsub.f32 %v1411_v21, %v70_v26  ;;  %v165_v9 = vand.u32 4294901760, %v164_v62  ;;  %v178_v11 = vsub.f32 %v1522_v55, %v177_v63 }
  0x14   :  { %1106 = vmatprep.subr.bf16.mxu1 %v1457_v34  ;;  %1202 = vmatprep.subr.bf16.mxu0 %v1457_v34  ;;  %v191_v12 = vand.u32 4294901760, %v1548_v0  ;;  %v198_v14 = vand.u32 4294901760, %v1553_v1  ;;  %v1121_v15 = vpack.c.bf16 %v158_v3, %v151_v2  ;;  %v172_v16 = vand.u32 4294901760, %v171_v4 }
  0x15   :  { %v185_v19 = vsub.f32 %v1532_v59, %v184_v5  ;;  %v1576_v20 = vsub.f32 %v1416_v22, %v73_v27  ;;  %v140_v21 = vand.u32 4294901760, %v139_v7  ;;  %v1221_v24 = vpack.c.bf16 %v170_v58, %v163_v54 }
  0x16   :  { %v205_v26 = vand.u32 4294901760, %v1563_v8  ;;  %v1582_v30 = vsub.f32 %v1437_v28, %v76_v31  ;;  %v192_v32 = vsub.f32 %v1548_v0, %v191_v12  ;;  %v199_v33 = vsub.f32 %v1553_v1, %v198_v14 }
  0x17   :  { %1108 = vmatpush3.bf16.msra.mxu1 %v1457_v34  ;;  %1204 = vmatpush3.bf16.msra.mxu0 %v1457_v34  ;;  %v1591_v22 = vsub.f32 %v1442_v29, %v79_v35  ;;  %v1125_v27 = vpack.c.bf16 %v172_v16, %v165_v9  ;;  %v179_v47 = vand.u32 4294901760, %v178_v11  ;;  %v186_v48 = vand.u32 4294901760, %v185_v19 }
  0x18   :  { %1110 = vmatprep.subr.bf16.mxu1 %v1498_v46  ;;  %1206 = vmatprep.subr.bf16.mxu0 %v1498_v46  ;;  %v212_v28 = vand.u32 4294901760, %v1576_v20  ;;  %v1225_v31 = vpack.c.bf16 %v184_v5, %v177_v63  ;;  %v206_v54 = vsub.f32 %v1563_v8, %v205_v26  ;;  %v1598_v56 = vsub.f32 %v1463_v36, %v82_v41 }
  0x19   :  { %v193_v29 = vand.u32 4294901760, %v192_v32  ;;  %v200_v35 = vand.u32 4294901760, %v199_v33  ;;  %v219_v57 = vand.u32 4294901760, %v1582_v30  ;;  %v226_v58 = vand.u32 4294901760, %v1591_v22 }
  0x1a   :  { %v1129_v62 = vpack.c.bf16 %v186_v48, %v179_v47  ;;  %v1606_v63 = vsub.f32 %v1468_v37, %v85_v42  ;;  %v1229_v36 = vpack.c.bf16 %v198_v14, %v191_v12  ;;  %v207_v41 = vand.u32 4294901760, %v206_v54 }
  0x1b   :  { %1112 = vmatpush3.bf16.msra.mxu1 %v1498_v46  ;;  %1208 = vmatpush3.bf16.msra.mxu0 %v1498_v46  ;;  %v1133_v2 = vpack.c.bf16 %v200_v35, %v193_v29  ;;  %v220_v3 = vsub.f32 %v1582_v30, %v219_v57  ;;  %v227_v4 = vsub.f32 %v1591_v22, %v226_v58  ;;  %v233_v5 = vand.u32 4294901760, %v1598_v56 }
  0x1c   :  { %1114 = vmatprep.subr.bf16.mxu1 %v1516_v53  ;;  %1210 = vmatprep.subr.bf16.mxu0 %v1516_v53  ;;  %v240_v37 = vand.u32 4294901760, %v1606_v63  ;;  %v1617_v42 = vsub.f32 %v1483_v43, %v88_v50  ;;  %v1622_v7 = vsub.f32 %v1488_v44, %v91_v51  ;;  %v1233_v9 = vpack.c.bf16 %v212_v28, %v205_v26 }
  0x1d   :  { %v221_v11 = vand.u32 4294901760, %v220_v3  ;;  %v228_v12 = vand.u32 4294901760, %v227_v4  ;;  %v234_v14 = vsub.f32 %v1598_v56, %v233_v5  ;;  %v1237_v51 = vpack.c.bf16 %v226_v58, %v219_v57 }
  0x1e   :  { %v241_v16 = vsub.f32 %v1606_v63, %v240_v37  ;;  %v247_v43 = vand.u32 4294901760, %v1617_v42  ;;  %v254_v50 = vand.u32 4294901760, %v1622_v7  ;;  %v1241_v33 = vpack.c.bf16 %v240_v37, %v233_v5 }
  0x1f   :  { %1116 = vmatpush3.bf16.msra.mxu1 %v1516_v53  ;;  %1212 = vmatpush3.bf16.msra.mxu0 %v1516_v53  ;;  %v1141_v44 = vpack.c.bf16 %v228_v12, %v221_v11  ;;  %v235_v19 = vand.u32 4294901760, %v234_v14  ;;  %v1157_v54 = vpack.c.bf16 %v1503_v49, %v1490_v45  ;;  %vm22_vm0 = vcmask 261120  }
  0x20   :  { %1118 = vmatprep.subr.bf16.mxu1 %v1538_v60  ;;  %1214 = vmatprep.subr.bf16.mxu0 %v1538_v60  ;;  %v255_v26 = vsub.f32 %v1622_v7, %v254_v50 }
  0x22   :  { %v256_v47 = vand.u32 4294901760, %v255_v26 }
  0x23   :  { %1120 = vmatpush3.bf16.msra.mxu1 %v1538_v60  ;;  %1216 = vmatpush3.bf16.msra.mxu0 %v1538_v60 }
  0x24   :  { %1122 = vmatprep.subr.bf16.mxu1 %v1121_v15  ;;  %1218 = vmatprep.subr.bf16.mxu0 %v1217_v6 }
  0x26   :  { %912 = vmatmul.mubr.f32.vlgmr.msra.gmra.mrb[0].mxu1 %v140_v21  ;;  %1017 = vmatmul.mubr.f32.vlgmr.msra.gmra.mrb[0].mxu0 %v138_v61  ;;  %v213_v61 = vsub.f32 %v1576_v20, %v212_v28  ;;  %v242_v21 = vand.u32 4294901760, %v241_v16  ;;  %v1245_v28 = vpack.c.bf16 %v254_v50, %v247_v43 }
  0x27   :  { %1124 = vmatpush3.bf16.msra.mxu1 %v1121_v15  ;;  %1220 = vmatpush3.bf16.msra.mxu0 %v1217_v6 }
  0x28   :  { %1126 = vmatprep.subr.bf16.mxu1 %v1125_v27  ;;  %1222 = vmatprep.subr.bf16.mxu0 %v1221_v24  ;;  %v214_v6 = vand.u32 4294901760, %v213_v61  ;;  %v1145_v32 = vpack.c.bf16 %v242_v21, %v235_v19 }
  0x29   :  { %946 = vmatprep.mubr.f32.mxu1 %v1396_v17  ;;  %1051 = vmatprep.mubr.f32.mxu0 %v1396_v17 }
  0x2a   :  { %v1137_v15 = vpack.c.bf16 %v214_v6, %v207_v41 }
  0x2b   :  { %1128 = vmatpush3.bf16.msra.mxu1 %v1125_v27  ;;  %1224 = vmatpush3.bf16.msra.mxu0 %v1221_v24  ;;  %v248_v24 = vsub.f32 %v1617_v42, %v247_v43 }
  0x2c   :  { %1130 = vmatprep.subr.bf16.mxu1 %v1129_v62  ;;  %1226 = vmatprep.subr.bf16.mxu0 %v1225_v31 }
  0x2d   :  { %v249_v27 = vand.u32 4294901760, %v248_v24 }
  0x2f   :  { %1132 = vmatpush3.bf16.msra.mxu1 %v1129_v62  ;;  %1228 = vmatpush3.bf16.msra.mxu0 %v1225_v31  ;;  %v1149_v48 = vpack.c.bf16 %v256_v47, %v249_v27  ;;  %v1153_v31 = vpack.c.bf16 %v1472_v39, %v1470_v38  ;;  %v1161_v38 = vpack.c.bf16 %v1532_v59, %v1522_v55 }
  0x30   :  { %1134 = vmatprep.subr.bf16.mxu1 %v1133_v2  ;;  %1230 = vmatprep.subr.bf16.mxu0 %v1229_v36  ;;  %v1165_v39 = vpack.c.bf16 %v1553_v1, %v1548_v0  ;;  %v749_v1 = vld [vmem:[%s1698_s3 + $0x8] sm:$0xff] }
  0x33   :  { %1136 = vmatpush3.bf16.msra.mxu1 %v1133_v2  ;;  %1232 = vmatpush3.bf16.msra.mxu0 %v1229_v36 }
  0x34   :  { %1138 = vmatprep.subr.bf16.mxu1 %v1137_v15  ;;  %1234 = vmatprep.subr.bf16.mxu0 %v1233_v9 }
  0x37   :  { %1140 = vmatpush3.bf16.msra.mxu1 %v1137_v15  ;;  %1236 = vmatpush3.bf16.msra.mxu0 %v1233_v9 }
  0x38   :  { %1142 = vmatprep.subr.bf16.mxu1 %v1141_v44  ;;  %1238 = vmatprep.subr.bf16.mxu0 %v1237_v51 }
  0x3b   :  { %1144 = vmatpush3.bf16.msra.mxu1 %v1141_v44  ;;  %1240 = vmatpush3.bf16.msra.mxu0 %v1237_v51 }
  0x3c   :  { %1146 = vmatprep.subr.bf16.mxu1 %v1145_v32  ;;  %1242 = vmatprep.subr.bf16.mxu0 %v1241_v33 }
  0x3f   :  { %1148 = vmatpush3.bf16.msra.mxu1 %v1145_v32  ;;  %1244 = vmatpush3.bf16.msra.mxu0 %v1241_v33 }
  0x40   :  { %1150 = vmatprep.subr.bf16.mxu1 %v1149_v48  ;;  %1246 = vmatprep.subr.bf16.mxu0 %v1245_v28 }
  0x43   :  { %1152 = vmatpush3.bf16.msra.mxu1 %v1149_v48  ;;  %1248 = vmatpush3.bf16.msra.mxu0 %v1245_v28 }
  0x44   :  { %1154 = vmatprep.subr.bf16.mxu1 %v1153_v31  ;;  %1250 = vmatprep.subr.bf16.mxu0 %v1373_v10 }
  0x46   :  { %947 = vmatmul.mubr.f32.vlgmr.msra.gmra.mrb[0].mxu1 %v1474_v40  ;;  %1052 = vmatmul.mubr.f32.vlgmr.msra.gmra.mrb[0].mxu0 %v1474_v40 }
  0x47   :  { %1156 = vmatpush3.bf16.msra.mxu1 %v1153_v31  ;;  %1252 = vmatpush3.bf16.msra.mxu0 %v1373_v10  ;;  %v1169_v10 = vpack.c.bf16 %v1576_v20, %v1563_v8 }
  0x48   :  { %1158 = vmatprep.subr.bf16.mxu1 %v1157_v54  ;;  %1254 = vmatprep.subr.bf16.mxu0 %v1377_v13 }
  0x49   :  { %981 = vmatprep.mubr.f32.mxu1 %v1419_v23  ;;  %1086 = vmatprep.mubr.f32.mxu0 %v1396_v17  ;;  %v1177_v17 = vpack.c.bf16 %v1606_v63, %v1598_v56  ;;  %v1319_v23 = vmov 0.0  }
  0x4a   :  { %24 = vst.msk [vmem:[#allocation2 + $0x8] sm:$0xff] %vm22_vm0, %v1319_v23  ;;  %23 = vst.msk [vmem:[#allocation2] sm:$0xff] %vm22_vm0, %v1319_v23 }
  0x4b   :  { %1160 = vmatpush3.bf16.msra.mxu1 %v1157_v54  ;;  %1256 = vmatpush3.bf16.msra.mxu0 %v1377_v13  ;;  %v1173_v13 = vpack.c.bf16 %v1591_v22, %v1582_v30  ;;  %v748_v30 = vld [vmem:[%s1698_s3] sm:$0xff] }
  0x4c   :  { %1162 = vmatprep.subr.bf16.mxu1 %v1161_v38  ;;  %1258 = vmatprep.subr.bf16.mxu0 %v1404_v18 }
  0x4f   :  { %1164 = vmatpush3.bf16.msra.mxu1 %v1161_v38  ;;  %1260 = vmatpush3.bf16.msra.mxu0 %v1404_v18  ;;  %v1181_v18 = vpack.c.bf16 %v1622_v7, %v1617_v42 }
  0x50   :  { %1166 = vmatprep.subr.bf16.mxu1 %v1165_v39  ;;  %1262 = vmatprep.subr.bf16.mxu0 %v1430_v25 }
  0x53   :  { %1168 = vmatpush3.bf16.msra.mxu1 %v1165_v39  ;;  %1264 = vmatpush3.bf16.msra.mxu0 %v1430_v25 }
  0x54   :  { %1170 = vmatprep.subr.bf16.mxu1 %v1169_v10  ;;  %1266 = vmatprep.subr.bf16.mxu0 %v1457_v34 }
  0x57   :  { %1172 = vmatpush3.bf16.msra.mxu1 %v1169_v10  ;;  %1268 = vmatpush3.bf16.msra.mxu0 %v1457_v34  ;;  %v26_v34 = vld [vmem:[#allocation2 + $0x8] sm:$0xff] }
  0x58   :  { %1174 = vmatprep.subr.bf16.mxu1 %v1173_v13  ;;  %1270 = vmatprep.subr.bf16.mxu0 %v1498_v46 }
  0x5b   :  { %1176 = vmatpush3.bf16.msra.mxu1 %v1173_v13  ;;  %1272 = vmatpush3.bf16.msra.mxu0 %v1498_v46 }
  0x5c   :  { %1178 = vmatprep.subr.bf16.mxu1 %v1177_v17  ;;  %1274 = vmatprep.subr.bf16.mxu0 %v1516_v53 }
  0x5f   :  { %1180 = vmatpush3.bf16.msra.mxu1 %v1177_v17  ;;  %1276 = vmatpush3.bf16.msra.mxu0 %v1516_v53  ;;  %v25_v53 = vld [vmem:[#allocation2] sm:$0xff] }
  0x60   :  { %1182 = vmatprep.subr.bf16.mxu1 %v1181_v18  ;;  %1278 = vmatprep.subr.bf16.mxu0 %v1538_v60 }
  0x63   :  { %1184 = vmatpush3.bf16.msra.mxu1 %v1181_v18  ;;  %1280 = vmatpush3.bf16.msra.mxu0 %v1538_v60 }
  0x66   :  { %982 = vmatmul.mubr.f32.vlgmr.msra.gmra.mrb[0].mxu1 %v1508_v52  ;;  %1087 = vmatmul.mubr.f32.vlgmr.msra.gmra.mrb[0].mxu0 %v1474_v40  ;;  %v770_v40 = vld [vmem:[%s1697_s2] ss:$0 sm:$0xff]  ;;  %s1295_s2 = scalar_lea.vmem %s760_s28, 256 }
  0x67   :  { %p1296_p0 = scmp.ne.s32.totalorder %s760_s28, %s1295_s2  ;;  %p1301_p2 = scmp.lt.s32.totalorder %s1295_s2, %s1295_s2 }
  0x69   :  { %p1302_p3 = por %p1301_p2, %p1300_p1 }
  0x6b   :  { %p1303_p4 = pnand %p1302_p3, %p1296_p0 }
 0x139   :  { %v983_v25 = vpop.f32.mrb[0].mxu1  ;;  %v1088_v45 = vpop.f32.mrb[0].mxu0 }
 0x13a   :  { %v1281_v46 = vadd.f32 %v1088_v45, %v983_v25  ;;  %v403_v49 = vpop.f32.mrb[1].mxu1  ;;  %v719_v55 = vpop.f32.mrb[1].mxu0 }
 0x13b   :  { %v1282_v59 = vadd.f32 %v719_v55, %v403_v49 }
 0x13c   :  { %v730_v0 = vadd.f32 %v1281_v46, %v26_v34 }
 0x13d   :  { %v729_v60 = vadd.f32 %v1282_v59, %v25_v53 }
 0x13e   :  { %733 = vst.msk [vmem:[#allocation2 + $0x8] sm:$0xff] %vm22_vm0, %v730_v0 }
 0x13f   :  { %732 = vst.msk [vmem:[#allocation2] sm:$0xff] %vm22_vm0, %v729_v60 }
 0x145   :  { %v738_v52 = vld [vmem:[#allocation2 + $0x8] sm:$0xff] }
 0x146   :  { %v737_v8 = vld [vmem:[#allocation2] sm:$0xff]  ;;  %v747_v20 = vadd.f32 %v770_v40, %v738_v52 }
 0x147   :  { %v746_v22 = vadd.f32 %v770_v40, %v737_v8 }
 0x148   :  { %v751_v56 = vadd.f32 %v749_v1, %v747_v20 }
 0x149   :  { %v750_v29 = vadd.f32 %v748_v30, %v746_v22 }
 0x14a   :  { %753 = vst.msk [vmem:[#allocation3 + $0x8] sm:$0xff] %vm22_vm0, %v751_v56 }
 0x14b   :  { %752 = vst.msk [vmem:[#allocation3] sm:$0xff] %vm22_vm0, %v750_v29 }
 0x14c   :  { %1306 = shalt.err (!%p1303_p4)
}
 0x14d   :  { %s1307_s7 = scalar_lea.hbm %s1699_s4, 256 }
 0x14e   :  { %p1308_p5 = scmp.ne.s32.totalorder %s1699_s4, %s1307_s7  ;;  %p1311_p6 = scmp.lt.u32.totalorder %s1307_s7, %s1699_s4 }
 0x150   :  { %p1313_p7 = pnand %p1311_p6, %p1308_p5 }
 0x152   :  { %1316 = shalt.err (!%p1313_p7)
}
 0x153   :  { %s1321_s11 = smov 128   ;;  %s1322_s12 = smov 8  }
 0x154   :  { %765 = dma.vmem_to_hbm [thread:$0]  %s760_s28, 256, %s1699_s4, [#allocation4], %s1321_s11, %s1321_s11, %s1322_s12  }
 0x155   :  { %1317 = dma.done.wait [#allocation4], 256  }
 0x156   :  { %1318 = vsyncadd [#allocation4], 4294967040 }
 0x157   :  { %769 = vsyncpa [#allocation4], 1 }

</bundles_post_ra>
